<compile_context>
chip_gen: v7x
topology: tpu7x:2x2x1
jax: 0.10.0
libtpu: 0.0.40
codegen_flags: <defaults>
</compile_context>

<pallas_src>
import math

import jax
import jax.numpy as jnp
from jax.experimental import pallas as pl
from jax.experimental.pallas import tpu as pltpu

# ----------------------- model configuration (DANet defaults) ----------------
NUM_CLASSES = 4            # CFG['num_classes'] comes from an external yaml; fixed here
LAYER_NUM = 32             # -> 16 BasicBlocks (1 init + 15 extra)
BASE_OUTDIM = 64
K = 5
BN_EPS = 1e-5
N_BLOCKS = LAYER_NUM // 2
D_HALF = BASE_OUTDIM // 2
FC3_PAD = 128              # lane-dense padded logits width (real logits sliced outside)

# bf16 weights halve HBM traffic; MXU accumulates in f32 (preferred_element_type).
# Flip to jnp.float32 to reproduce the PyTorch f32 reference numerics exactly.
WEIGHT_DTYPE = jnp.bfloat16


# ----------------------------- fused Pallas kernel ---------------------------
def _danet_kernel(x_pad_ref, x_raw_ref,
                  c1w_ref, c1b_ref, c2w_ref, c2b_ref, dw_ref, db_ref,
                  gs_h_ref, gs_f_ref,
                  fc1w_ref, fc1b_ref, fc2w_ref, fc2b_ref, fc3w_ref, fc3b_ref,
                  o_ref, pre_ref):
    i = pl.program_id(1)                       # BasicBlock index (inner, sequential)
    f32 = jnp.float32

    def mm(h, w):
        # f32 accumulation regardless of weight dtype (bf16 or f32).
        return jnp.dot(h.astype(w.dtype), w, preferred_element_type=f32)

    def abstract(h, w_ref, b_ref, gs_ref):
        # AbstractLayer: masked grouped conv + eval-BN folded into two matmuls,
        # GLU epilogue, then the K-way group sum as a matmul on the MXU.
        y_sig = mm(h, w_ref[0, 0]) + b_ref[0, 0]          # (B, K*out)
        y_lin = mm(h, w_ref[0, 1]) + b_ref[0, 1]          # (B, K*out)
        z = jnp.maximum(jax.nn.sigmoid(y_sig) * y_lin, 0.0)
        return mm(z, gs_ref[...])                         # (B, out)

    # Initialize the carried activation with the zero-padded input for this
    # batch tile (block 0's conv1 weight rows are zero-padded to match).
    @pl.when(i == 0)
    def _():
        pre_ref[...] = x_pad_ref[...]

    pre = pre_ref[...]
    h1 = abstract(pre, c1w_ref, c1b_ref, gs_h_ref)                # (B, 32)
    h2 = abstract(h1, c2w_ref, c2b_ref, gs_f_ref)                 # (B, 64)
    ident = abstract(x_raw_ref[...], dw_ref, db_ref, gs_f_ref)    # (B, 64) downsample(x)
    s = h2 + ident
    pre_ref[...] = jnp.where(s >= 0.0, s, 0.01 * s)               # leaky_relu(., 0.01)

    # Classification head (final Dropout(0.1) is identity in eval mode).
    @pl.when(i == pl.num_programs(1) - 1)
    def _():
        h = jnp.maximum(mm(pre_ref[...], fc1w_ref[...]) + fc1b_ref[...], 0.0)
        h = jnp.maximum(mm(h, fc2w_ref[...]) + fc2b_ref[...], 0.0)
        o_ref[...] = mm(h, fc3w_ref[...]) + fc3b_ref[...]         # (B, 128) lane-dense


# ----------------------------- kernel wrapper ---------------------------------
_PER_BLOCK = ("c1w", "c1b", "c2w", "c2b", "dw", "db")
_SHARED = ("gs32", "gs64", "fc1_w", "fc1_b", "fc2_w", "fc2_b", "fc3_w", "fc3_b")


def danet_forward(params, x, *, batch_tile=None):
    B, d_in = x.shape
    bt = B if batch_tile is None else batch_tile
    assert B % bt == 0, "batch must be a multiple of batch_tile"

    # Zero-pad x to BASE_OUTDIM columns: it seeds the carried `pre` activation.
    x_pad = jnp.pad(x, ((0, 0), (0, BASE_OUTDIM - d_in)))

    def batch_spec(shape):
        nd = len(shape)
        return pl.BlockSpec((bt,) + tuple(shape[1:]),
                            lambda b, i, _nd=nd: (b,) + (0,) * (_nd - 1))

    def block_spec(shape):
        nd = len(shape)
        return pl.BlockSpec((1,) + tuple(shape[1:]),
                            lambda b, i, _nd=nd: (i,) + (0,) * (_nd - 1))

    def whole_spec(shape):
        nd = len(shape)
        return pl.BlockSpec(tuple(shape), lambda b, i, _nd=nd: (0,) * _nd)

    args = ((x_pad, x)
            + tuple(params[n] for n in _PER_BLOCK)
            + tuple(params[n] for n in _SHARED))
    in_specs = ([batch_spec(x_pad.shape), batch_spec(x.shape)]
                + [block_spec(params[n].shape) for n in _PER_BLOCK]
                + [whole_spec(params[n].shape) for n in _SHARED])

    grid = (B // bt, N_BLOCKS)

    # Advisory cost estimate so XLA can overlap neighbors with the weight DMA.
    flops = 2 * B * (
        N_BLOCKS * (2 * BASE_OUTDIM * K * D_HALF + K * D_HALF * D_HALF
                    + 2 * D_HALF * K * BASE_OUTDIM + K * BASE_OUTDIM * BASE_OUTDIM
                    + 2 * d_in * K * BASE_OUTDIM + K * BASE_OUTDIM * BASE_OUTDIM)
        + BASE_OUTDIM * 256 + 256 * 512 + 512 * FC3_PAD)
    transcendentals = B * N_BLOCKS * (K * D_HALF + 2 * K * BASE_OUTDIM)
    bytes_accessed = int(sum(a.size * jnp.dtype(a.dtype).itemsize for a in args)
                         + B * FC3_PAD * 4)

    out = pl.pallas_call(
        _danet_kernel,
        grid_spec=pltpu.PrefetchScalarGridSpec(
            num_scalar_prefetch=0,
            grid=grid,
            in_specs=in_specs,
            out_specs=pl.BlockSpec((bt, FC3_PAD), lambda b, i: (b, 0)),
            scratch_shapes=[pltpu.VMEM((bt, BASE_OUTDIM), jnp.float32)],
        ),
        out_shape=jax.ShapeDtypeStruct((B, FC3_PAD), jnp.float32),
        compiler_params=pltpu.CompilerParams(
            dimension_semantics=("parallel", "arbitrary"),
            vmem_limit_bytes=8 * 1024 * 1024),
        cost_estimate=pl.CostEstimate(flops=flops,
                                      transcendentals=transcendentals,
                                      bytes_accessed=bytes_accessed),
    )(*args)
    return out[:, :NUM_CLASSES]


# --------------------------- pure-JAX reference --------------------------------
def danet_reference(params, x):
    """Same folded parameters / same math, written as plain JAX (sanity check)."""
    f32 = jnp.float32

    def mm(h, w):
        return jnp.dot(h.astype(w.dtype), w, preferred_element_type=f32)

    def abstract(h, w2, b2, gs):
        y_sig = mm(h, w2[0]) + b2[0]
        y_lin = mm(h, w2[1]) + b2[1]
        z = jnp.maximum(jax.nn.sigmoid(y_sig) * y_lin, 0.0)
        return mm(z, gs)

    x_pad = jnp.pad(x, ((0, 0), (0, BASE_OUTDIM - x.shape[1])))
    pre = x_pad
    for i in range(N_BLOCKS):
        h1 = abstract(pre, params["c1w"][i], params["c1b"][i], params["gs32"])
        h2 = abstract(h1, params["c2w"][i], params["c2b"][i], params["gs64"])
        ident = abstract(x, params["dw"][i], params["db"][i], params["gs64"])
        s = h2 + ident
        pre = jnp.where(s >= 0.0, s, 0.01 * s)
    h = jnp.maximum(mm(pre, params["fc1_w"]) + params["fc1_b"], 0.0)
    h = jnp.maximum(mm(h, params["fc2_w"]) + params["fc2_b"], 0.0)
    out = mm(h, params["fc3_w"]) + params["fc3_b"]
    return out[:, :NUM_CLASSES]


# ------------------------- parameter construction -----------------------------
def entmax15(z, axis=-1):
    """Exact 1.5-entmax (sparsemax.Entmax15), applied to the locality weights."""
    z = z - jnp.max(z, axis=axis, keepdims=True)
    z = z / 2.0
    z_sorted = jnp.sort(z, axis=axis)[..., ::-1]
    n = z.shape[axis]
    rho = jnp.arange(1, n + 1, dtype=z.dtype)
    mean = jnp.cumsum(z_sorted, axis=-1) / rho
    mean_sq = jnp.cumsum(z_sorted ** 2, axis=-1) / rho
    ss = rho * (mean_sq - mean ** 2)
    delta = jnp.clip((1.0 - ss) / rho, 0.0, None)
    tau = mean - jnp.sqrt(delta)
    support = jnp.sum(tau <= z_sorted, axis=-1, keepdims=True)
    tau_star = jnp.take_along_axis(tau, support - 1, axis=-1)
    return jnp.clip(z - tau_star, 0.0, None) ** 2


def make_abstract_params(key, d_in, d_out):
    """AbstractLayer(d_in -> d_out): entmax15 locality mask + grouped Conv1d +
    eval-mode GBN folded into matmul weights.

    Returns:
      w2: (2, d_in, K*d_out)  [sigmoid half, linear half], columns = g*d_out + c
      b2: (2, 1,   K*d_out)
    """
    k_mask, k_w = jax.random.split(key)
    # LearnableLocality weight ~ torch.rand, then entmax15 over features.
    mask = entmax15(jax.random.uniform(k_mask, (K, d_in), jnp.float32), axis=-1)
    # Conv1d weight after kaiming_uniform_(nonlinearity='relu'); groups=K; bias=0.
    bound = math.sqrt(6.0 / d_in)
    w = jax.random.uniform(k_w, (K, 2, d_out, d_in), jnp.float32, -bound, bound)
    b = jnp.zeros((K, 2, d_out), jnp.float32)
    # GBN / BatchNorm1d eval mode with default buffers -> per-channel affine.
    gamma = jnp.ones((K, 2, d_out), jnp.float32)
    beta = jnp.zeros((K, 2, d_out), jnp.float32)
    run_mean = jnp.zeros((K, 2, d_out), jnp.float32)
    run_var = jnp.ones((K, 2, d_out), jnp.float32)
    s = gamma / jnp.sqrt(run_var + BN_EPS)
    t = beta - run_mean * s
    # Fold mask and BN into the matmul weight / bias.
    w_eff = w * mask[:, None, None, :] * s[..., None]              # (K,2,d_out,d_in)
    w2 = jnp.transpose(w_eff, (1, 3, 0, 2)).reshape(2, d_in, K * d_out)
    b2 = jnp.transpose(b * s + t, (1, 0, 2)).reshape(2, 1, K * d_out)
    return w2, b2


def make_danet_params(key, input_dim):
    keys = jax.random.split(key, 3 * N_BLOCKS + 3)

    c1, c2, dn = [], [], []
    for i in range(N_BLOCKS):
        d_in1 = input_dim if i == 0 else BASE_OUTDIM
        w1, b1 = make_abstract_params(keys[3 * i + 0], d_in1, D_HALF)
        if i == 0:
            # Zero-pad block 0's conv1 weight rows (input_dim -> BASE_OUTDIM) so every
            # block shares one block-indexed array; the extra rows see zero-padded x.
            w1 = jnp.pad(w1, ((0, 0), (0, BASE_OUTDIM - input_dim), (0, 0)))
        c1.append((w1, b1))
        c2.append(make_abstract_params(keys[3 * i + 1], D_HALF, BASE_OUTDIM))
        dn.append(make_abstract_params(keys[3 * i + 2], input_dim, BASE_OUTDIM))

    stack_w = lambda ps: jnp.stack([w for w, _ in ps]).astype(WEIGHT_DTYPE)
    stack_b = lambda ps: jnp.stack([b for _, b in ps])             # biases stay f32

    def linear_init(kk, din, dout, pad_to=None):
        bound = math.sqrt(6.0 / din)                               # kaiming_uniform_, relu
        w = jax.random.uniform(kk, (din, dout), jnp.float32, -bound, bound)
        b = jnp.zeros((1, dout), jnp.float32)
        if pad_to is not None and pad_to > dout:
            w = jnp.pad(w, ((0, 0), (0, pad_to - dout)))
            b = jnp.pad(b, ((0, 0), (0, pad_to - dout)))
        return w.astype(WEIGHT_DTYPE), b

    fc1_w, fc1_b = linear_init(keys[-3], BASE_OUTDIM, 256)
    fc2_w, fc2_b = linear_init(keys[-2], 256, 512)
    fc3_w, fc3_b = linear_init(keys[-1], 512, NUM_CLASSES, pad_to=FC3_PAD)

    # K-way group-sum matrices (stacked identities), exact in f32.
    gs32 = jnp.tile(jnp.eye(D_HALF, dtype=jnp.float32), (K, 1))      # (160, 32)
    gs64 = jnp.tile(jnp.eye(BASE_OUTDIM, dtype=jnp.float32), (K, 1))  # (320, 64)

    return dict(c1w=stack_w(c1), c1b=stack_b(c1),        # (16,2,64,160), (16,2,1,160)
                c2w=stack_w(c2), c2b=stack_b(c2),        # (16,2,32,320), (16,2,1,320)
                dw=stack_w(dn), db=stack_b(dn),          # (16,2,12,320), (16,2,1,320)
                gs32=gs32, gs64=gs64,
                fc1_w=fc1_w, fc1_b=fc1_b, fc2_w=fc2_w, fc2_b=fc2_b,
                fc3_w=fc3_w, fc3_b=fc3_b)


# ----------------------------------- main --------------------------------------
if __name__ == "__main__":
    # TODO(synk): training-mode GBN (virtual-batch statistics) and Dropout noise
    # are not modeled; this implements inference-mode semantics.
    n_meta = 12                 # n_meta_features = len(meta_feats)
    batch = 8                   # latency-sized demo batch; for throughput grow the
                                # batch and pass batch_tile (e.g. 128/256) so the
                                # leading "parallel" axis shards across v7x's 2 TCs.

    key = jax.random.PRNGKey(0)
    pkey, xkey = jax.random.split(key)
    params = make_danet_params(pkey, n_meta)
    x = jax.random.normal(xkey, (batch, n_meta), dtype=jnp.float32)

    logits = jax.jit(danet_forward)(params, x)
    jax.block_until_ready(logits)
    assert logits.shape == (batch, NUM_CLASSES)
    assert bool(jnp.all(jnp.isfinite(logits)))

    # Sanity check against a pure-JAX evaluation of the same folded parameters.
    ref = jax.jit(danet_reference)(params, x)
    jax.block_until_ready(ref)
    scale = float(jnp.max(jnp.abs(ref))) + 1e-6
    err = float(jnp.max(jnp.abs(logits - ref)))
    assert err <= 3e-2 * scale + 3e-3, (err, scale)

    print("KERNEL_OK")
</pallas_src>

<mosaic_0001>
module attributes {stable_mosaic.version = 11 : i64} {
  func.func @_danet_kernel(%arg0: i32, %arg1: i32, %arg2: memref<8x64xf32, #tpu.memory_space<vmem>>, %arg3: memref<8x12xf32, #tpu.memory_space<vmem>>, %arg4: memref<1x2x64x160xbf16, #tpu.memory_space<vmem>>, %arg5: memref<1x2x1x160xf32, #tpu.memory_space<vmem>>, %arg6: memref<1x2x32x320xbf16, #tpu.memory_space<vmem>>, %arg7: memref<1x2x1x320xf32, #tpu.memory_space<vmem>>, %arg8: memref<1x2x12x320xbf16, #tpu.memory_space<vmem>>, %arg9: memref<1x2x1x320xf32, #tpu.memory_space<vmem>>, %arg10: memref<160x32xf32, #tpu.memory_space<vmem>>, %arg11: memref<320x64xf32, #tpu.memory_space<vmem>>, %arg12: memref<64x256xbf16, #tpu.memory_space<vmem>>, %arg13: memref<1x256xf32, #tpu.memory_space<vmem>>, %arg14: memref<256x512xbf16, #tpu.memory_space<vmem>>, %arg15: memref<1x512xf32, #tpu.memory_space<vmem>>, %arg16: memref<512x128xbf16, #tpu.memory_space<vmem>>, %arg17: memref<1x128xf32, #tpu.memory_space<vmem>>, %arg18: memref<8x128xf32, #tpu.memory_space<vmem>>, %arg19: memref<8x64xf32, #tpu.memory_space<vmem>>) attributes {dimension_semantics = [#tpu.dimension_semantics<parallel>, #tpu.dimension_semantics<arbitrary>], iteration_bounds = array<i64: 1, 16>, scalar_prefetch = 0 : i64, scratch_operands = 1 : i64, tpu.core_type = #tpu.core_type<tc>, window_params = [{transform_indices = @transform_0, window_bounds = array<i64: 8, 64>}, {transform_indices = @transform_1, window_bounds = array<i64: 8, 12>}, {transform_indices = @transform_2, window_bounds = array<i64: 1, 2, 64, 160>}, {transform_indices = @transform_3, window_bounds = array<i64: 1, 2, 1, 160>}, {transform_indices = @transform_4, window_bounds = array<i64: 1, 2, 32, 320>}, {transform_indices = @transform_5, window_bounds = array<i64: 1, 2, 1, 320>}, {transform_indices = @transform_6, window_bounds = array<i64: 1, 2, 12, 320>}, {transform_indices = @transform_7, window_bounds = array<i64: 1, 2, 1, 320>}, {pipeline_mode = #tpu.pipeline_mode<synchronous>, transform_indices = @transform_8, window_bounds = array<i64: 160, 32>}, {pipeline_mode = #tpu.pipeline_mode<synchronous>, transform_indices = @transform_9, window_bounds = array<i64: 320, 64>}, {pipeline_mode = #tpu.pipeline_mode<synchronous>, transform_indices = @transform_10, window_bounds = array<i64: 64, 256>}, {pipeline_mode = #tpu.pipeline_mode<synchronous>, transform_indices = @transform_11, window_bounds = array<i64: 1, 256>}, {pipeline_mode = #tpu.pipeline_mode<synchronous>, transform_indices = @transform_12, window_bounds = array<i64: 256, 512>}, {pipeline_mode = #tpu.pipeline_mode<synchronous>, transform_indices = @transform_13, window_bounds = array<i64: 1, 512>}, {pipeline_mode = #tpu.pipeline_mode<synchronous>, transform_indices = @transform_14, window_bounds = array<i64: 512, 128>}, {pipeline_mode = #tpu.pipeline_mode<synchronous>, transform_indices = @transform_15, window_bounds = array<i64: 1, 128>}, {transform_indices = @transform_16, window_bounds = array<i64: 8, 128>}]} {
    %c0_i32 = arith.constant 0 : i32
    %0 = arith.cmpi eq, %arg1, %c0_i32 : i32
    %1 = arith.extui %0 : i1 to i32
    %c0_i32_0 = arith.constant 0 : i32
    %2 = arith.cmpi ne, %1, %c0_i32_0 : i32
    scf.if %2 {
      %c0_76 = arith.constant 0 : index
      %c0_77 = arith.constant 0 : index
      %93 = vector.load %arg2[%c0_76, %c0_77] : memref<8x64xf32, #tpu.memory_space<vmem>>, vector<8x64xf32>
      %c0_78 = arith.constant 0 : index
      %c0_79 = arith.constant 0 : index
      %94 = vector.load %arg19[%c0_78, %c0_79] : memref<8x64xf32, #tpu.memory_space<vmem>>, vector<8x64xf32>
      tpu.vector_store %arg19[%c0_78, %c0_79], %93 {strides = array<i32>} : memref<8x64xf32, #tpu.memory_space<vmem>>, vector<8x64xf32>,
    } else {
    }
    %c0 = arith.constant 0 : index
    %c0_1 = arith.constant 0 : index
    %3 = vector.load %arg19[%c0, %c0_1] : memref<8x64xf32, #tpu.memory_space<vmem>>, vector<8x64xf32>
    %c0_2 = arith.constant 0 : index
    %c0_3 = arith.constant 0 : index
    %c0_4 = arith.constant 0 : index
    %c0_5 = arith.constant 0 : index
    %4 = vector.load %arg4[%c0_2, %c0_3, %c0_4, %c0_5] : memref<1x2x64x160xbf16, #tpu.memory_space<vmem>>, vector<1x1x64x160xbf16>
    %5 = vector.shape_cast %4 : vector<1x1x64x160xbf16> to vector<64x160xbf16>
    %6 = arith.truncf %3 : vector<8x64xf32> to vector<8x64xbf16>
    %cst = arith.constant dense<0.000000e+00> : vector<8x160xf32>
    %7 = tpu.matmul %6, %5, %cst {dimension_numbers = #tpu.dot_dimension_numbers<[1], [0], [0], [1], [0, 0, 1, 1], [], []>} : vector<8x64xbf16>, vector<64x160xbf16>, vector<8x160xf32> -> vector<8x160xf32>
    %c0_6 = arith.constant 0 : index
    %c0_7 = arith.constant 0 : index
    %c0_8 = arith.constant 0 : index
    %c0_9 = arith.constant 0 : index
    %8 = vector.load %arg5[%c0_6, %c0_7, %c0_8, %c0_9] : memref<1x2x1x160xf32, #tpu.memory_space<vmem>>, vector<1x1x1x160xf32>
    %9 = vector.shape_cast %8 : vector<1x1x1x160xf32> to vector<1x160xf32>
    %10 = vector.broadcast %9 : vector<1x160xf32> to vector<8x160xf32>
    %11 = arith.addf %7, %10 : vector<8x160xf32>
    %c0_10 = arith.constant 0 : index
    %c1 = arith.constant 1 : index
    %c0_11 = arith.constant 0 : index
    %c0_12 = arith.constant 0 : index
    %12 = vector.load %arg4[%c0_10, %c1, %c0_11, %c0_12] : memref<1x2x64x160xbf16, #tpu.memory_space<vmem>>, vector<1x1x64x160xbf16>
    %13 = vector.shape_cast %12 : vector<1x1x64x160xbf16> to vector<64x160xbf16>
    %14 = arith.truncf %3 : vector<8x64xf32> to vector<8x64xbf16>
    %cst_13 = arith.constant dense<0.000000e+00> : vector<8x160xf32>
    %15 = tpu.matmul %14, %13, %cst_13 {dimension_numbers = #tpu.dot_dimension_numbers<[1], [0], [0], [1], [0, 0, 1, 1], [], []>} : vector<8x64xbf16>, vector<64x160xbf16>, vector<8x160xf32> -> vector<8x160xf32>
    %c0_14 = arith.constant 0 : index
    %c1_15 = arith.constant 1 : index
    %c0_16 = arith.constant 0 : index
    %c0_17 = arith.constant 0 : index
    %16 = vector.load %arg5[%c0_14, %c1_15, %c0_16, %c0_17] : memref<1x2x1x160xf32, #tpu.memory_space<vmem>>, vector<1x1x1x160xf32>
    %17 = vector.shape_cast %16 : vector<1x1x1x160xf32> to vector<1x160xf32>
    %18 = vector.broadcast %17 : vector<1x160xf32> to vector<8x160xf32>
    %19 = arith.addf %15, %18 : vector<8x160xf32>
    %20 = arith.negf %11 : vector<8x160xf32>
    %21 = math.exp %20 : vector<8x160xf32>
    %cst_18 = arith.constant 1.000000e+00 : f32
    %22 = vector.broadcast %cst_18 : f32 to vector<8x160xf32>
    %23 = arith.addf %22, %21 : vector<8x160xf32>
    %24 = arith.divf %22, %23 : vector<8x160xf32>
    %25 = arith.mulf %24, %19 : vector<8x160xf32>
    %cst_19 = arith.constant 0.000000e+00 : f32
    %26 = vector.broadcast %cst_19 : f32 to vector<8x160xf32>
    %27 = arith.maximumf %25, %26 : vector<8x160xf32>
    %c0_20 = arith.constant 0 : index
    %c0_21 = arith.constant 0 : index
    %28 = vector.load %arg10[%c0_20, %c0_21] : memref<160x32xf32, #tpu.memory_space<vmem>>, vector<160x32xf32>
    %cst_22 = arith.constant dense<0.000000e+00> : vector<8x32xf32>
    %29 = tpu.matmul %27, %28, %cst_22 {dimension_numbers = #tpu.dot_dimension_numbers<[1], [0], [0], [1], [0, 0, 1, 1], [], []>} : vector<8x160xf32>, vector<160x32xf32>, vector<8x32xf32> -> vector<8x32xf32>
    %c0_23 = arith.constant 0 : index
    %c0_24 = arith.constant 0 : index
    %c0_25 = arith.constant 0 : index
    %c0_26 = arith.constant 0 : index
    %30 = vector.load %arg6[%c0_23, %c0_24, %c0_25, %c0_26] : memref<1x2x32x320xbf16, #tpu.memory_space<vmem>>, vector<1x1x32x320xbf16>
    %31 = vector.shape_cast %30 : vector<1x1x32x320xbf16> to vector<32x320xbf16>
    %32 = arith.truncf %29 : vector<8x32xf32> to vector<8x32xbf16>
    %cst_27 = arith.constant dense<0.000000e+00> : vector<8x320xf32>
    %33 = tpu.matmul %32, %31, %cst_27 {dimension_numbers = #tpu.dot_dimension_numbers<[1], [0], [0], [1], [0, 0, 1, 1], [], []>} : vector<8x32xbf16>, vector<32x320xbf16>, vector<8x320xf32> -> vector<8x320xf32>
    %c0_28 = arith.constant 0 : index
    %c0_29 = arith.constant 0 : index
    %c0_30 = arith.constant 0 : index
    %c0_31 = arith.constant 0 : index
    %34 = vector.load %arg7[%c0_28, %c0_29, %c0_30, %c0_31] : memref<1x2x1x320xf32, #tpu.memory_space<vmem>>, vector<1x1x1x320xf32>
    %35 = vector.shape_cast %34 : vector<1x1x1x320xf32> to vector<1x320xf32>
    %36 = vector.broadcast %35 : vector<1x320xf32> to vector<8x320xf32>
    %37 = arith.addf %33, %36 : vector<8x320xf32>
    %c0_32 = arith.constant 0 : index
    %c1_33 = arith.constant 1 : index
    %c0_34 = arith.constant 0 : index
    %c0_35 = arith.constant 0 : index
    %38 = vector.load %arg6[%c0_32, %c1_33, %c0_34, %c0_35] : memref<1x2x32x320xbf16, #tpu.memory_space<vmem>>, vector<1x1x32x320xbf16>
    %39 = vector.shape_cast %38 : vector<1x1x32x320xbf16> to vector<32x320xbf16>
    %40 = arith.truncf %29 : vector<8x32xf32> to vector<8x32xbf16>
    %cst_36 = arith.constant dense<0.000000e+00> : vector<8x320xf32>
    %41 = tpu.matmul %40, %39, %cst_36 {dimension_numbers = #tpu.dot_dimension_numbers<[1], [0], [0], [1], [0, 0, 1, 1], [], []>} : vector<8x32xbf16>, vector<32x320xbf16>, vector<8x320xf32> -> vector<8x320xf32>
    %c0_37 = arith.constant 0 : index
    %c1_38 = arith.constant 1 : index
    %c0_39 = arith.constant 0 : index
    %c0_40 = arith.constant 0 : index
    %42 = vector.load %arg7[%c0_37, %c1_38, %c0_39, %c0_40] : memref<1x2x1x320xf32, #tpu.memory_space<vmem>>, vector<1x1x1x320xf32>
    %43 = vector.shape_cast %42 : vector<1x1x1x320xf32> to vector<1x320xf32>
    %44 = vector.broadcast %43 : vector<1x320xf32> to vector<8x320xf32>
    %45 = arith.addf %41, %44 : vector<8x320xf32>
    %46 = arith.negf %37 : vector<8x320xf32>
    %47 = math.exp %46 : vector<8x320xf32>
    %cst_41 = arith.constant 1.000000e+00 : f32
    %48 = vector.broadcast %cst_41 : f32 to vector<8x320xf32>
    %49 = arith.addf %48, %47 : vector<8x320xf32>
    %50 = arith.divf %48, %49 : vector<8x320xf32>
    %51 = arith.mulf %50, %45 : vector<8x320xf32>
    %cst_42 = arith.constant 0.000000e+00 : f32
    %52 = vector.broadcast %cst_42 : f32 to vector<8x320xf32>
    %53 = arith.maximumf %51, %52 : vector<8x320xf32>
    %c0_43 = arith.constant 0 : index
    %c0_44 = arith.constant 0 : index
    %54 = vector.load %arg11[%c0_43, %c0_44] : memref<320x64xf32, #tpu.memory_space<vmem>>, vector<320x64xf32>
    %cst_45 = arith.constant dense<0.000000e+00> : vector<8x64xf32>
    %55 = tpu.matmul %53, %54, %cst_45 {dimension_numbers = #tpu.dot_dimension_numbers<[1], [0], [0], [1], [0, 0, 1, 1], [], []>} : vector<8x320xf32>, vector<320x64xf32>, vector<8x64xf32> -> vector<8x64xf32>
    %c0_46 = arith.constant 0 : index
    %c0_47 = arith.constant 0 : index
    %56 = vector.load %arg3[%c0_46, %c0_47] : memref<8x12xf32, #tpu.memory_space<vmem>>, vector<8x12xf32>
    %c0_48 = arith.constant 0 : index
    %c0_49 = arith.constant 0 : index
    %c0_50 = arith.constant 0 : index
    %c0_51 = arith.constant 0 : index
    %57 = vector.load %arg8[%c0_48, %c0_49, %c0_50, %c0_51] : memref<1x2x12x320xbf16, #tpu.memory_space<vmem>>, vector<1x1x12x320xbf16>
    %58 = vector.shape_cast %57 : vector<1x1x12x320xbf16> to vector<12x320xbf16>
    %59 = arith.truncf %56 : vector<8x12xf32> to vector<8x12xbf16>
    %cst_52 = arith.constant dense<0.000000e+00> : vector<8x320xf32>
    %60 = tpu.matmul %59, %58, %cst_52 {dimension_numbers = #tpu.dot_dimension_numbers<[1], [0], [0], [1], [0, 0, 1, 1], [], []>} : vector<8x12xbf16>, vector<12x320xbf16>, vector<8x320xf32> -> vector<8x320xf32>
    %c0_53 = arith.constant 0 : index
    %c0_54 = arith.constant 0 : index
    %c0_55 = arith.constant 0 : index
    %c0_56 = arith.constant 0 : index
    %61 = vector.load %arg9[%c0_53, %c0_54, %c0_55, %c0_56] : memref<1x2x1x320xf32, #tpu.memory_space<vmem>>, vector<1x1x1x320xf32>
    %62 = vector.shape_cast %61 : vector<1x1x1x320xf32> to vector<1x320xf32>
    %63 = vector.broadcast %62 : vector<1x320xf32> to vector<8x320xf32>
    %64 = arith.addf %60, %63 : vector<8x320xf32>
    %c0_57 = arith.constant 0 : index
    %c1_58 = arith.constant 1 : index
    %c0_59 = arith.constant 0 : index
    %c0_60 = arith.constant 0 : index
    %65 = vector.load %arg8[%c0_57, %c1_58, %c0_59, %c0_60] : memref<1x2x12x320xbf16, #tpu.memory_space<vmem>>, vector<1x1x12x320xbf16>
    %66 = vector.shape_cast %65 : vector<1x1x12x320xbf16> to vector<12x320xbf16>
    %67 = arith.truncf %56 : vector<8x12xf32> to vector<8x12xbf16>
    %cst_61 = arith.constant dense<0.000000e+00> : vector<8x320xf32>
    %68 = tpu.matmul %67, %66, %cst_61 {dimension_numbers = #tpu.dot_dimension_numbers<[1], [0], [0], [1], [0, 0, 1, 1], [], []>} : vector<8x12xbf16>, vector<12x320xbf16>, vector<8x320xf32> -> vector<8x320xf32>
    %c0_62 = arith.constant 0 : index
    %c1_63 = arith.constant 1 : index
    %c0_64 = arith.constant 0 : index
    %c0_65 = arith.constant 0 : index
    %69 = vector.load %arg9[%c0_62, %c1_63, %c0_64, %c0_65] : memref<1x2x1x320xf32, #tpu.memory_space<vmem>>, vector<1x1x1x320xf32>
    %70 = vector.shape_cast %69 : vector<1x1x1x320xf32> to vector<1x320xf32>
    %71 = vector.broadcast %70 : vector<1x320xf32> to vector<8x320xf32>
    %72 = arith.addf %68, %71 : vector<8x320xf32>
    %73 = arith.negf %64 : vector<8x320xf32>
    %74 = math.exp %73 : vector<8x320xf32>
    %cst_66 = arith.constant 1.000000e+00 : f32
    %75 = vector.broadcast %cst_66 : f32 to vector<8x320xf32>
    %76 = arith.addf %75, %74 : vector<8x320xf32>
    %77 = arith.divf %75, %76 : vector<8x320xf32>
    %78 = arith.mulf %77, %72 : vector<8x320xf32>
    %cst_67 = arith.constant 0.000000e+00 : f32
    %79 = vector.broadcast %cst_67 : f32 to vector<8x320xf32>
    %80 = arith.maximumf %78, %79 : vector<8x320xf32>
    %c0_68 = arith.constant 0 : index
    %c0_69 = arith.constant 0 : index
    %81 = vector.load %arg11[%c0_68, %c0_69] : memref<320x64xf32, #tpu.memory_space<vmem>>, vector<320x64xf32>
    %cst_70 = arith.constant dense<0.000000e+00> : vector<8x64xf32>
    %82 = tpu.matmul %80, %81, %cst_70 {dimension_numbers = #tpu.dot_dimension_numbers<[1], [0], [0], [1], [0, 0, 1, 1], [], []>} : vector<8x320xf32>, vector<320x64xf32>, vector<8x64xf32> -> vector<8x64xf32>
    %83 = arith.addf %55, %82 : vector<8x64xf32>
    %cst_71 = arith.constant 0.000000e+00 : f32
    %84 = vector.broadcast %cst_71 : f32 to vector<8x64xf32>
    %85 = arith.cmpf oge, %83, %84 : vector<8x64xf32>
    %cst_72 = arith.constant 0.00999999977 : f32
    %86 = vector.broadcast %cst_72 : f32 to vector<8x64xf32>
    %87 = arith.mulf %86, %83 : vector<8x64xf32>
    %88 = arith.select %85, %83, %87 : vector<8x64xi1>, vector<8x64xf32>
    %c0_73 = arith.constant 0 : index
    %c0_74 = arith.constant 0 : index
    %89 = vector.load %arg19[%c0_73, %c0_74] : memref<8x64xf32, #tpu.memory_space<vmem>>, vector<8x64xf32>
    tpu.vector_store %arg19[%c0_73, %c0_74], %88 {strides = array<i32>} : memref<8x64xf32, #tpu.memory_space<vmem>>, vector<8x64xf32>,
    %c15_i32 = arith.constant 15 : i32
    %90 = arith.cmpi eq, %arg1, %c15_i32 : i32
    %91 = arith.extui %90 : i1 to i32
    %c0_i32_75 = arith.constant 0 : i32
    %92 = arith.cmpi ne, %91, %c0_i32_75 : i32
    scf.if %92 {
      %c0_76 = arith.constant 0 : index
      %c0_77 = arith.constant 0 : index
      %93 = vector.load %arg19[%c0_76, %c0_77] : memref<8x64xf32, #tpu.memory_space<vmem>>, vector<8x64xf32>
      %c0_78 = arith.constant 0 : index
      %c0_79 = arith.constant 0 : index
      %94 = vector.load %arg12[%c0_78, %c0_79] : memref<64x256xbf16, #tpu.memory_space<vmem>>, vector<64x256xbf16>
      %95 = arith.truncf %93 : vector<8x64xf32> to vector<8x64xbf16>
      %cst_80 = arith.constant dense<0.000000e+00> : vector<8x256xf32>
      %96 = tpu.matmul %95, %94, %cst_80 {dimension_numbers = #tpu.dot_dimension_numbers<[1], [0], [0], [1], [0, 0, 1, 1], [], []>} : vector<8x64xbf16>, vector<64x256xbf16>, vector<8x256xf32> -> vector<8x256xf32>
      %c0_81 = arith.constant 0 : index
      %c0_82 = arith.constant 0 : index
      %97 = vector.load %arg13[%c0_81, %c0_82] : memref<1x256xf32, #tpu.memory_space<vmem>>, vector<1x256xf32>
      %98 = vector.broadcast %97 : vector<1x256xf32> to vector<8x256xf32>
      %99 = arith.addf %96, %98 : vector<8x256xf32>
      %cst_83 = arith.constant 0.000000e+00 : f32
      %100 = vector.broadcast %cst_83 : f32 to vector<8x256xf32>
      %101 = arith.maximumf %99, %100 : vector<8x256xf32>
      %c0_84 = arith.constant 0 : index
      %c0_85 = arith.constant 0 : index
      %102 = vector.load %arg14[%c0_84, %c0_85] : memref<256x512xbf16, #tpu.memory_space<vmem>>, vector<256x512xbf16>
      %103 = arith.truncf %101 : vector<8x256xf32> to vector<8x256xbf16>
      %cst_86 = arith.constant dense<0.000000e+00> : vector<8x512xf32>
      %104 = tpu.matmul %103, %102, %cst_86 {dimension_numbers = #tpu.dot_dimension_numbers<[1], [0], [0], [1], [0, 0, 1, 1], [], []>} : vector<8x256xbf16>, vector<256x512xbf16>, vector<8x512xf32> -> vector<8x512xf32>
      %c0_87 = arith.constant 0 : index
      %c0_88 = arith.constant 0 : index
      %105 = vector.load %arg15[%c0_87, %c0_88] : memref<1x512xf32, #tpu.memory_space<vmem>>, vector<1x512xf32>
      %106 = vector.broadcast %105 : vector<1x512xf32> to vector<8x512xf32>
      %107 = arith.addf %104, %106 : vector<8x512xf32>
      %cst_89 = arith.constant 0.000000e+00 : f32
      %108 = vector.broadcast %cst_89 : f32 to vector<8x512xf32>
      %109 = arith.maximumf %107, %108 : vector<8x512xf32>
      %c0_90 = arith.constant 0 : index
      %c0_91 = arith.constant 0 : index
      %110 = vector.load %arg16[%c0_90, %c0_91] : memref<512x128xbf16, #tpu.memory_space<vmem>>, vector<512x128xbf16>
      %111 = arith.truncf %109 : vector<8x512xf32> to vector<8x512xbf16>
      %cst_92 = arith.constant dense<0.000000e+00> : vector<8x128xf32>
      %112 = tpu.matmul %111, %110, %cst_92 {dimension_numbers = #tpu.dot_dimension_numbers<[1], [0], [0], [1], [0, 0, 1, 1], [], []>} : vector<8x512xbf16>, vector<512x128xbf16>, vector<8x128xf32> -> vector<8x128xf32>
      %c0_93 = arith.constant 0 : index
      %c0_94 = arith.constant 0 : index
      %113 = vector.load %arg17[%c0_93, %c0_94] : memref<1x128xf32, #tpu.memory_space<vmem>>, vector<1x128xf32>
      %114 = vector.broadcast %113 : vector<1x128xf32> to vector<8x128xf32>
      %115 = arith.addf %112, %114 : vector<8x128xf32>
      %c0_95 = arith.constant 0 : index
      %c0_96 = arith.constant 0 : index
      %116 = vector.load %arg18[%c0_95, %c0_96] : memref<8x128xf32, #tpu.memory_space<vmem>>, vector<8x128xf32>
      tpu.vector_store %arg18[%c0_95, %c0_96], %115 {strides = array<i32>} : memref<8x128xf32, #tpu.memory_space<vmem>>, vector<8x128xf32>,
    } else {
    }
    return
  }
  func.func @transform_0(%arg0: i32, %arg1: i32) -> (i32, i32) {
    %c0_i32 = arith.constant 0 : i32
    %c0_i32_0 = arith.constant 0 : i32
    return %arg0, %c0_i32 : i32, i32
  }
  func.func @transform_1(%arg0: i32, %arg1: i32) -> (i32, i32) {
    %c0_i32 = arith.constant 0 : i32
    %c0_i32_0 = arith.constant 0 : i32
    return %arg0, %c0_i32 : i32, i32
  }
  func.func @transform_2(%arg0: i32, %arg1: i32) -> (i32, i32, i32, i32) {
    %c0_i32 = arith.constant 0 : i32
    %c0_i32_0 = arith.constant 0 : i32
    %c0_i32_1 = arith.constant 0 : i32
    %c0_i32_2 = arith.constant 0 : i32
    return %arg1, %c0_i32, %c0_i32_0, %c0_i32_1 : i32, i32, i32, i32
  }
  func.func @transform_3(%arg0: i32, %arg1: i32) -> (i32, i32, i32, i32) {
    %c0_i32 = arith.constant 0 : i32
    %c0_i32_0 = arith.constant 0 : i32
    %c0_i32_1 = arith.constant 0 : i32
    %c0_i32_2 = arith.constant 0 : i32
    return %arg1, %c0_i32, %c0_i32_0, %c0_i32_1 : i32, i32, i32, i32
  }
  func.func @transform_4(%arg0: i32, %arg1: i32) -> (i32, i32, i32, i32) {
    %c0_i32 = arith.constant 0 : i32
    %c0_i32_0 = arith.constant 0 : i32
    %c0_i32_1 = arith.constant 0 : i32
    %c0_i32_2 = arith.constant 0 : i32
    return %arg1, %c0_i32, %c0_i32_0, %c0_i32_1 : i32, i32, i32, i32
  }
  func.func @transform_5(%arg0: i32, %arg1: i32) -> (i32, i32, i32, i32) {
    %c0_i32 = arith.constant 0 : i32
    %c0_i32_0 = arith.constant 0 : i32
    %c0_i32_1 = arith.constant 0 : i32
    %c0_i32_2 = arith.constant 0 : i32
    return %arg1, %c0_i32, %c0_i32_0, %c0_i32_1 : i32, i32, i32, i32
  }
  func.func @transform_6(%arg0: i32, %arg1: i32) -> (i32, i32, i32, i32) {
    %c0_i32 = arith.constant 0 : i32
    %c0_i32_0 = arith.constant 0 : i32
    %c0_i32_1 = arith.constant 0 : i32
    %c0_i32_2 = arith.constant 0 : i32
    return %arg1, %c0_i32, %c0_i32_0, %c0_i32_1 : i32, i32, i32, i32
  }
  func.func @transform_7(%arg0: i32, %arg1: i32) -> (i32, i32, i32, i32) {
    %c0_i32 = arith.constant 0 : i32
    %c0_i32_0 = arith.constant 0 : i32
    %c0_i32_1 = arith.constant 0 : i32
    %c0_i32_2 = arith.constant 0 : i32
    return %arg1, %c0_i32, %c0_i32_0, %c0_i32_1 : i32, i32, i32, i32
  }
  func.func @transform_8(%arg0: i32, %arg1: i32) -> (i32, i32) {
    %c0_i32 = arith.constant 0 : i32
    %c0_i32_0 = arith.constant 0 : i32
    %c0_i32_1 = arith.constant 0 : i32
    return %c0_i32, %c0_i32_0 : i32, i32
  }
  func.func @transform_9(%arg0: i32, %arg1: i32) -> (i32, i32) {
    %c0_i32 = arith.constant 0 : i32
    %c0_i32_0 = arith.constant 0 : i32
    %c0_i32_1 = arith.constant 0 : i32
    return %c0_i32, %c0_i32_0 : i32, i32
  }
  func.func @transform_10(%arg0: i32, %arg1: i32) -> (i32, i32) {
    %c0_i32 = arith.constant 0 : i32
    %c0_i32_0 = arith.constant 0 : i32
    %c0_i32_1 = arith.constant 0 : i32
    return %c0_i32, %c0_i32_0 : i32, i32
  }
  func.func @transform_11(%arg0: i32, %arg1: i32) -> (i32, i32) {
    %c0_i32 = arith.constant 0 : i32
    %c0_i32_0 = arith.constant 0 : i32
    %c0_i32_1 = arith.constant 0 : i32
    return %c0_i32, %c0_i32_0 : i32, i32
  }
  func.func @transform_12(%arg0: i32, %arg1: i32) -> (i32, i32) {
    %c0_i32 = arith.constant 0 : i32
    %c0_i32_0 = arith.constant 0 : i32
    %c0_i32_1 = arith.constant 0 : i32
    return %c0_i32, %c0_i32_0 : i32, i32
  }
  func.func @transform_13(%arg0: i32, %arg1: i32) -> (i32, i32) {
    %c0_i32 = arith.constant 0 : i32
    %c0_i32_0 = arith.constant 0 : i32
    %c0_i32_1 = arith.constant 0 : i32
    return %c0_i32, %c0_i32_0 : i32, i32
  }
  func.func @transform_14(%arg0: i32, %arg1: i32) -> (i32, i32) {
    %c0_i32 = arith.constant 0 : i32
    %c0_i32_0 = arith.constant 0 : i32
    %c0_i32_1 = arith.constant 0 : i32
    return %c0_i32, %c0_i32_0 : i32, i32
  }
  func.func @transform_15(%arg0: i32, %arg1: i32) -> (i32, i32) {
    %c0_i32 = arith.constant 0 : i32
    %c0_i32_0 = arith.constant 0 : i32
    %c0_i32_1 = arith.constant 0 : i32
    return %c0_i32, %c0_i32_0 : i32, i32
  }
  func.func @transform_16(%arg0: i32, %arg1: i32) -> (i32, i32) {
    %c0_i32 = arith.constant 0 : i32
    %c0_i32_0 = arith.constant 0 : i32
    return %arg0, %c0_i32 : i32, i32
  }
}

</mosaic_0001>

<bundles_post_ra>
// kernel: danet_forward.1
= control target key start
LH: loop header
LB: loop body
LE: loop exit
PB: predicated region body
PF: predicated region fallthrough
CT: control target
= control target key end

     0   :  { %s5211_s0 = inlined_call_operand.vmem [shape: f32[8,64], index: 0, kind: input, shape index: {}]   ;;  %s5212_s1 = inlined_call_operand.vmem [shape: f32[8,12], index: 1, kind: input, shape index: {}]   ;;  %s5213_s2 = inlined_call_operand.vmem [shape: bf16[16,2,64,160], index: 2, kind: input, shape index: {}]   ;;  %s5214_s3 = inlined_call_operand.hbm [shape: f32[16,2,1,160], index: 3, kind: input, shape index: {}]   ;;  %s5215_s4 = inlined_call_operand.hbm [shape: bf16[16,2,32,320], index: 4, kind: input, shape index: {}]   ;;  %s5216_s5 = inlined_call_operand.hbm [shape: f32[16,2,1,320], index: 5, kind: input, shape index: {}]   ;;  %s5217_s6 = inlined_call_operand.vmem [shape: bf16[16,2,12,320], index: 6, kind: input, shape index: {}]   ;;  %s5218_s7 = inlined_call_operand.hbm [shape: f32[16,2,1,320], index: 7, kind: input, shape index: {}]   ;;  %s5219_s8 = inlined_call_operand.vmem [shape: f32[160,32], index: 8, kind: input, shape index: {}]   ;;  %s5220_s9 = inlined_call_operand.vmem [shape: f32[320,64], index: 9, kind: input, shape index: {}]   ;;  %s5221_s10 = inlined_call_operand.hbm [shape: bf16[64,256], index: 10, kind: input, shape index: {}]   ;;  %s5222_s11 = inlined_call_operand.vmem [shape: f32[1,256], index: 11, kind: input, shape index: {}]   ;;  %s5223_s12 = inlined_call_operand.hbm [shape: bf16[256,512], index: 12, kind: input, shape index: {}]   ;;  %s5224_s13 = inlined_call_operand.vmem [shape: f32[1,512], index: 13, kind: input, shape index: {}]   ;;  %s5225_s14 = inlined_call_operand.hbm [shape: bf16[512,128], index: 14, kind: input, shape index: {}]   ;;  %s5226_s15 = inlined_call_operand.vmem [shape: f32[1,128], index: 15, kind: input, shape index: {}]   ;;  %s5227_s16 = inlined_call_operand.vmem [shape: f32[8,128], index: 16, kind: output, shape index: {}]  }
   0x1   :  { %5242 = sst [smem:[#allocation21_spill]] %s5211_s0 }
   0x2   :  { %5243 = sst [smem:[#allocation22_spill]] %s5212_s1 }
   0x3   :  { %5244 = sst [smem:[#allocation23_spill]] %s5213_s2 }
   0x4   :  { %5245 = sst [smem:[#allocation24_spill]] %s5215_s4 }
   0x5   :  { %5246 = sst [smem:[#allocation25_spill]] %s5217_s6 }
   0x6   :  { %5247 = sst [smem:[#allocation26_spill]] %s5219_s8 }
   0x7   :  { %5248 = sst [smem:[#allocation27_spill]] %s5220_s9 }
   0x8   :  { %5249 = sst [smem:[#allocation28_spill]] %s5221_s10 }
   0x9   :  { %5250 = sst [smem:[#allocation29_spill]] %s5222_s11 }
   0xa   :  { %5251 = sst [smem:[#allocation30_spill]] %s5223_s12 }
   0xb   :  { %5252 = sst [smem:[#allocation31_spill]] %s5224_s13 }
   0xc   :  { %5253 = sst [smem:[#allocation32_spill]] %s5226_s15 }
   0xd   :  { %5254 = sst [smem:[#allocation33_spill]] %s5227_s16 }
   0xe   :  { %21 = vsyncpa [#allocation4], 0 }
   0xf   :  { %23 = vsyncpa [#allocation4 + $0x1], 0 }
  0x10   :  { %24 = vsyncpa [#allocation6], 0 }
  0x11   :  { %26 = vsyncpa [#allocation6 + $0x1], 0 }
  0x12   :  { %27 = vsyncpa [#allocation9], 0 }
  0x13   :  { %29 = vsyncpa [#allocation9 + $0x1], 0 }
  0x14   :  { %30 = vsyncpa [#allocation12], 0  ;;  %s4476_s21 = smov 0   ;;  %s4478_s22 = smov 0  }
  0x15   :  { %s4480_s23 = smov 0   ;;  %s4482_s24 = smov 0  }
  0x16   :  { %s4484_s25 = smov 0   ;;  %s4486_s26 = smov 0  }
  0x17 LB: > { %s5228_s27 = sadd.s32 4294967295, %s4365_s26   ;;  %p140_p0 = scmp.ne.s32.totalorder %s4353_s23, %s4349_s22  ;;  %s4365_s26 = sphi %s4486_s26, %s36_s26   ;;  %s4361_s25 = sphi %s4484_s25, %s5294_s25   ;;  %s4357_s24 = sphi %s4482_s24, %s5293_s24   ;;  %s4353_s23 = sphi %s4480_s23, %s5292_s23   ;;  %s4349_s22 = sphi %s4478_s22, %s5291_s22   ;;  %s4345_s21 = sphi %s4476_s21, %s5290_s21  }
  0x18   : > { %p141_p1 = scmp.eq.s32.totalorder %s4365_s26, 0  ;;  %p146_p2 = scmp.ne.s32.totalorder %s4349_s22, %s4345_s21 }
  0x19   : > { %p4512_p3 = scmp.eq.s32.totalorder %s5228_s27, 0  ;;  %p3204_p5 = scmp.ge.s32.totalorder %s4365_s26, 1 }
  0x1a   : > { %p4516_p4 = por %p141_p1, %p140_p0  ;;  %p455_p7 = scmp.lt.s32.totalorder %s4365_s26, 17 }
  0x1b   : > { %s5255_s29 = scalar_select %p4512_p3, 1, 0 }
  0x1c   : > { %s5256_s30 = scalar_select %p4516_p4, 1, 0 }
  0x1d   : > { %p4523_p6 = por %p4512_p3, %p146_p2  ;;  %p4528_p8 = pnand %p3204_p5, %p455_p7 }
  0x1e   : > { %s4367_s18 = smov [#allocation10]   ;;  %s4368_s21 = smov [#allocation11]  }
  0x1f   : > { %s5257_s0 = scalar_select %p4523_p6, 1, 0 }
  0x20   : > { %s5258_s17 = scalar_select %p4528_p8, 1, 0 }
  0x21   : > { %s487_s19 = sshll.u32 %s4367_s18, 4  ;;  %p3777_p9 = pneg %p4528_p8  ;;  %s488_s19 = int_to_ptr.vmem [resolvable:$true] %s487_s19 }
  0x22   : > { %s503_s27 = sshll.u32 %s4368_s21, 4  ;;  %s5260_s10 = sld [smem:[#allocation28_spill]]  ;;  %s4540_s27 = int_to_ptr.vmem [resolvable:$true] %s503_s27 }
  0x23   : > { %p4536_p10 = pnand %p3777_p9, %p4512_p3 }
  0x25   : > { %s5259_s20 = scalar_select %p4536_p10, 1, 0 }
  0x26   : > { %p4550_p12 = pneg %p4536_p10 }
  0x28   : > { %s4095_s15 = scalar_lea.hbm %s5260_s10, 1024 }
  0x29   : > { %p4096_p11 = scmp.ne.s32.totalorder %s5260_s10, %s4095_s15  ;;  %p4102_p1 = scmp.lt.u32.totalorder %s4095_s15, %s5260_s10 }
  0x2a   : > { %s5261_s18 = scalar_select %p4550_p12, 1, 0 }
  0x2b   : > { %p4098_p13 = pnand %p4550_p12, %p4096_p11 }
  0x2d   : > { %p4099_p0 = pneg %p4098_p13 }
  0x2f   : > { %p4104_p2 = pnand %p4102_p1, %p4099_p0 }
  0x31   : > { %4107 = shalt.err (!%p4104_p2)
}
  0x32   : > { %s4108_s16 = scalar_lea.vmem %s488_s19, 1024  ;;  %p4116_p3 = scmp.lt.s32.totalorder %s488_s19, %s488_s19 }
  0x33   : > { %p4109_p5 = scmp.ne.s32.totalorder %s488_s19, %s4108_s16  ;;  %p4117_p6 = scmp.lt.s32.totalorder %s4108_s16, %s4108_s16 }
  0x35   : > { %p4111_p7 = pnand %p4109_p5, %p4550_p12  ;;  %p4118_p8 = por %p4117_p6, %p4116_p3 }
  0x37   : > { %p4112_p9 = pneg %p4111_p7 }
  0x39   : > { %p4119_p4 = pnand %p4118_p8, %p4112_p9 }
  0x3b   : > { %4122 = shalt.err (!%p4119_p4)
}
  0x3c   : > { %s4369_s11 = smov 128   ;;  %s4370_s13 = smov 8  }
  0x3d   : > { %3780 = dma.hbm_to_vmem [thread:$0]  (!%p4536_p10), %s5260_s10, 1024, %s488_s19, [#allocation9], %s4369_s11, %s4369_s11, %s4370_s13  }
  0x3e   : > { %s5262_s12 = sld [smem:[#allocation30_spill]] }
  0x44   : > { %s4123_s1 = scalar_lea.hbm %s5262_s12, 8192 }
  0x45   : > { %p4124_p11 = scmp.ne.s32.totalorder %s5262_s12, %s4123_s1  ;;  %p4130_p6 = scmp.lt.u32.totalorder %s4123_s1, %s5262_s12 }
  0x47   : > { %p4126_p3 = pnand %p4124_p11, %p4550_p12 }
  0x49   : > { %p4127_p4 = pneg %p4126_p3 }
  0x4b   : > { %p4132_p8 = pnand %p4130_p6, %p4127_p4 }
  0x4d   : > { %4135 = shalt.err (!%p4132_p8)
}
  0x4e   : > { %s4136_s19 = scalar_lea.vmem %s4540_s27, 8192  ;;  %p4144_p2 = scmp.lt.s32.totalorder %s4540_s27, %s4540_s27 }
  0x4f   : > { %p4137_p13 = scmp.ne.s32.totalorder %s4540_s27, %s4136_s19  ;;  %p4145_p5 = scmp.lt.s32.totalorder %s4136_s19, %s4136_s19 }
  0x51   : > { %p4139_p0 = pnand %p4137_p13, %p4550_p12  ;;  %p4146_p7 = por %p4145_p5, %p4144_p2 }
  0x53   : > { %p4140_p1 = pneg %p4139_p0 }
  0x55   : > { %p4147_p9 = pnand %p4146_p7, %p4140_p1 }
  0x57   : > { %4150 = shalt.err (!%p4147_p9)
}
  0x58   : > { %s4371_s6 = smov 256   ;;  %s4372_s1 = smov 16  }
  0x59   : > { %3783 = dma.hbm_to_vmem [thread:$0]  (!%p4536_p10), %s5262_s12, 8192, %s4540_s27, [#allocation12], %s4371_s6, %s4371_s6, %s4372_s1  }
  0x5a   : > { %p3803_p11 = scmp.lt.s32.totalorder %s4365_s26, 16  ;;  %s4591_s11 = sand.u32 1, %s4353_s23  }
  0x5b   : > { %s45_s13 = sadd.s32 1, %s4361_s25  ;;  %p5263_p3 = scmp.ne.s32.totalorder %s5256_s30, 0 }
  0x5c   : > { %p46_p6 = scmp.ge.s32.totalorder %s45_s13, 16  ;;  %s5235_s15 = sand.u32 1, %s4365_s26  }
  0x5d   : > { %p4596_p4 = pnand %p3803_p11, %p5263_p3  ;;  %s3748_s28 = smul.u32 96, %s4591_s11 }
  0x5e   : > { %s5296_s13 = smov (%p46_p6, %s45_s13), 0  ;;  %s3749_s27 = smul.u32 1536, %s4361_s25 }
  0x5f   : > { %s5264_s9 = scalar_select %p4596_p4, 1, 0 }
  0x60   : > { %5265 = sst [smem:[#allocation19_spill]] %s5296_s13  ;;  %s130_s21 = ssub.s32 %s4361_s25, %s5296_s13 }
  0x61   : > { %p131_p8 = scmp.eq.s32.totalorder %s130_s21, 0  ;;  %s5266_s4 = sld [smem:[#allocation24_spill]] }
  0x62   : > { %s569_s30 = scalar_lea.vmem [#allocation5], %s3748_s28  ;;  %s5267_s2 = sadd.s32 1, %s4353_s23 }
  0x63   : > { %s576_s1 = sshll.u32 %s569_s30, 4  ;;  %s4621_s10 = scalar_lea.sflag [#allocation6], %s5235_s15  ;;  %s4617_s1 = int_to_ptr.vmem [resolvable:$true] %s576_s1 }
  0x64   : > { %s4615_s8 = scalar_select %p131_p8, %s4353_s23, %s5267_s2  }
  0x65   : > { %p4627_p0 = pneg %p4596_p4 }
  0x66   : > { %5268 = sst [smem:[#allocation20_spill]] %s4615_s8 }
  0x67   : > { %s4610_s6 = scalar_lea.hbm %s5266_s4, %s3749_s27  ;;  %s4156_s19 = scalar_lea.hbm %s5266_s4, 24576 }
  0x68   : > { %s4151_s21 = scalar_lea.hbm %s4610_s6, 1536  ;;  %p4157_p5 = scmp.lt.u32.totalorder %s4610_s6, %s5266_s4 }
  0x69   : > { %p4152_p13 = scmp.ne.s32.totalorder %s4610_s6, %s4151_s21  ;;  %p4158_p7 = scmp.lt.u32.totalorder %s4156_s19, %s4151_s21 }
  0x6a   : > { %p4160_p11 = scmp.lt.u32.totalorder %s4151_s21, %s4610_s6 }
  0x6b   : > { %p4154_p1 = pnand %p4627_p0, %p4152_p13  ;;  %p4159_p9 = por %p4158_p7, %p4157_p5 }
  0x6d   : > { %p4155_p2 = pneg %p4154_p1  ;;  %p4161_p3 = por %p4160_p11, %p4159_p9 }
  0x6f   : > { %p4162_p6 = pnand %p4161_p3, %p4155_p2 }
  0x71   : > { %4165 = shalt.err (!%p4162_p6)
}
  0x72   : > { %s4166_s15 = scalar_lea.vmem %s4617_s1, 1536  ;;  %s4373_s28 = smov [#allocation5]  }
  0x73   : > { %p4167_p8 = scmp.ne.s32.totalorder %s4617_s1, %s4166_s15  ;;  %s4171_s16 = sshll.u32 %s4373_s28, 4  ;;  %s4172_s16 = int_to_ptr.vmem [resolvable:$false] %s4171_s16 }
  0x74   : > { %s4173_s30 = scalar_lea.vmem %s4172_s16, 3072  ;;  %p4174_p10 = scmp.lt.s32.totalorder %s4617_s1, %s4172_s16 }
  0x75   : > { %p4169_p13 = pnand %p4167_p8, %p4627_p0  ;;  %p4175_p12 = scmp.lt.s32.totalorder %s4173_s30, %s4166_s15 }
  0x77   : > { %p4170_p1 = pneg %p4169_p13  ;;  %p4176_p5 = por %p4175_p12, %p4174_p10 }
  0x79   : > { %p4177_p7 = pnand %p4176_p5, %p4170_p1 }
  0x7b   : > { %4180 = shalt.err (!%p4177_p7)
}
  0x7c   : > { %s4374_s21 = smov 192   ;;  %s4375_s19 = smov 12  }
  0x7d   : > { %3793 = dma.hbm_to_vmem [thread:$0]  (!%p4596_p4), %s4610_s6, 1536, %s4617_s1, %s4621_s10, %s4374_s21, %s4374_s21, %s4375_s19  }
  0x7e   : > { %s4376_s2 = smov [#allocation13]   ;;  %s4181_s16 = scalar_lea.hbm %s5225_s14, 4096 }
  0x7f   : > { %s519_s4 = sshll.u32 %s4376_s2, 4  ;;  %p4182_p10 = scmp.ne.s32.totalorder %s5225_s14, %s4181_s16  ;;  %s520_s4 = int_to_ptr.vmem [resolvable:$true] %s519_s4 }
  0x80   : > { %p5270_p12 = scmp.ne.s32.totalorder %s5261_s18, 0  ;;  %p4188_p11 = scmp.lt.u32.totalorder %s4181_s16, %s5225_s14 }
  0x82   : > { %p4184_p2 = pnand %p4182_p10, %p5270_p12 }
  0x84   : > { %p4185_p9 = pneg %p4184_p2 }
  0x86   : > { %p4190_p3 = pnand %p4188_p11, %p4185_p9 }
  0x88   : > { %4193 = shalt.err (!%p4190_p3)
}
  0x89   : > { %s4194_s6 = scalar_lea.vmem %s520_s4, 4096  ;;  %p4202_p1 = scmp.lt.s32.totalorder %s520_s4, %s520_s4 }
  0x8a   : > { %p4195_p6 = scmp.ne.s32.totalorder %s520_s4, %s4194_s6  ;;  %p4203_p5 = scmp.lt.s32.totalorder %s4194_s6, %s4194_s6 }
  0x8c   : > { %p4197_p8 = pnand %p4195_p6, %p5270_p12  ;;  %p4204_p7 = por %p4203_p5, %p4202_p1 }
  0x8e   : > { %p4198_p13 = pneg %p4197_p8 }
  0x90   : > { %p4205_p4 = pnand %p4204_p7, %p4198_p13 }
  0x92   : > { %4208 = shalt.err (!%p4205_p4)
}
  0x93   : > { %s4377_s12 = smov 64   ;;  %s4378_s13 = smov 4  }
  0x94   : > { %p5271_p10 = scmp.ne.s32.totalorder %s5259_s20, 0  ;;  %s3211_s18 = sshll.u32 %s4591_s11, 2 }
  0x95   : > { %s3416_s21 = sshll.u32 %s4361_s25, 6  ;;  %s548_s16 = scalar_lea.vmem [#allocation3], %s3211_s18 }
  0x96   : > { %3786 = dma.hbm_to_vmem [thread:$0]  (!%p5271_p10), %s5225_s14, 4096, %s520_s4, [#allocation12], %s4377_s12, %s4377_s12, %s4378_s13  }
  0x97   : > { %s4674_s28 = scalar_lea.hbm %s5214_s3, %s3416_s21  ;;  %s555_s15 = sshll.u32 %s548_s16, 4  ;;  %s4676_s15 = int_to_ptr.vmem [resolvable:$true] %s555_s15 }
  0x98   : > { %s3750_s20 = smul.u32 6, %s4591_s11  ;;  %s545_s30 = scalar_lea.sflag [#allocation4], %s4591_s11 }
  0x99   : > { %s4209_s6 = scalar_lea.hbm %s4674_s28, 64  ;;  %s4214_s13 = scalar_lea.hbm %s5214_s3, 1024 }
  0x9a   : > { %p4210_p4 = scmp.ne.s32.totalorder %s4674_s28, %s4209_s6  ;;  %p4215_p9 = scmp.lt.u32.totalorder %s4674_s28, %s5214_s3 }
  0x9b   : > { %p4216_p11 = scmp.lt.u32.totalorder %s4214_s13, %s4209_s6  ;;  %p4218_p6 = scmp.lt.u32.totalorder %s4209_s6, %s4674_s28 }
  0x9c   : > { %p4212_p12 = pnand %p4210_p4, %p4627_p0 }
  0x9d   : > { %p4217_p3 = por %p4216_p11, %p4215_p9 }
  0x9e   : > { %p4213_p2 = pneg %p4212_p12 }
  0x9f   : > { %p4219_p8 = por %p4218_p6, %p4217_p3 }
  0xa1   : > { %p4220_p13 = pnand %p4219_p8, %p4213_p2 }
  0xa3   : > { %4223 = shalt.err (!%p4220_p13)
}
  0xa4   : > { %s4224_s18 = scalar_lea.vmem %s4676_s15, 64  ;;  %s4379_s21 = smov [#allocation3]  }
  0xa5   : > { %p4225_p1 = scmp.ne.s32.totalorder %s4676_s15, %s4224_s18  ;;  %s4229_s19 = sshll.u32 %s4379_s21, 4  ;;  %s4230_s19 = int_to_ptr.vmem [resolvable:$false] %s4229_s19 }
  0xa6   : > { %s4231_s2 = scalar_lea.vmem %s4230_s19, 128  ;;  %p4232_p10 = scmp.lt.s32.totalorder %s4676_s15, %s4230_s19 }
  0xa7   : > { %p4227_p5 = pnand %p4225_p1, %p4627_p0  ;;  %p4233_p4 = scmp.lt.s32.totalorder %s4231_s2, %s4224_s18 }
  0xa9   : > { %p4228_p7 = pneg %p4227_p5  ;;  %p4234_p12 = por %p4233_p4, %p4232_p10 }
  0xab   : > { %p4235_p9 = pnand %p4234_p12, %p4228_p7 }
  0xad   : > { %4238 = shalt.err (!%p4235_p9)
}
  0xae   : > { %s4380_s16 = smov 32   ;;  %s4381_s6 = smov 2  }
  0xaf   : > { %p5272_p2 = scmp.ne.s32.totalorder %s5264_s9, 0  ;;  %s3751_s4 = smul.u32 96, %s4361_s25 }
  0xb0   : > { %s590_s12 = scalar_lea.vmem [#allocation7], %s3750_s20 }
  0xb1   : > { %3790 = dma.hbm_to_vmem [thread:$0]  (!%p5272_p2), %s4674_s28, 64, %s4676_s15, %s545_s30, %s4380_s16, %s4380_s16, %s4381_s6  }
  0xb2   : > { %s597_s13 = sshll.u32 %s590_s12, 4  ;;  %s4711_s18 = scalar_lea.hbm %s5216_s5, %s3751_s4  ;;  %s4713_s13 = int_to_ptr.vmem [resolvable:$true] %s597_s13 }
  0xb3   : > { %s4239_s21 = scalar_lea.hbm %s4711_s18, 96  ;;  %s4244_s30 = scalar_lea.hbm %s5216_s5, 1536 }
  0xb4   : > { %p4240_p11 = scmp.ne.s32.totalorder %s4711_s18, %s4239_s21  ;;  %p4245_p8 = scmp.lt.u32.totalorder %s4711_s18, %s5216_s5 }
  0xb5   : > { %p4246_p13 = scmp.lt.u32.totalorder %s4244_s30, %s4239_s21  ;;  %p4248_p5 = scmp.lt.u32.totalorder %s4239_s21, %s4711_s18 }
  0xb6   : > { %p4242_p3 = pnand %p4240_p11, %p4627_p0 }
  0xb7   : > { %p4247_p1 = por %p4246_p13, %p4245_p8 }
  0xb8   : > { %p4243_p6 = pneg %p4242_p3 }
  0xb9   : > { %p4249_p7 = por %p4248_p5, %p4247_p1 }
  0xbb   : > { %p4250_p10 = pnand %p4249_p7, %p4243_p6 }
  0xbd   : > { %4253 = shalt.err (!%p4250_p10)
}
  0xbe   : > { %s4254_s16 = scalar_lea.vmem %s4713_s13, 96  ;;  %s4382_s6 = smov [#allocation7]  }
  0xbf   : > { %p4255_p4 = scmp.ne.s32.totalorder %s4713_s13, %s4254_s16  ;;  %s4259_s12 = sshll.u32 %s4382_s6, 4  ;;  %s4260_s12 = int_to_ptr.vmem [resolvable:$false] %s4259_s12 }
  0xc0   : > { %s4261_s1 = scalar_lea.vmem %s4260_s12, 192  ;;  %p4262_p11 = scmp.lt.s32.totalorder %s4713_s13, %s4260_s12 }
  0xc1   : > { %p4257_p12 = pnand %p4255_p4, %p4627_p0  ;;  %p4263_p3 = scmp.lt.s32.totalorder %s4261_s1, %s4254_s16 }
  0xc3   : > { %p4258_p9 = pneg %p4257_p12  ;;  %p4264_p8 = por %p4263_p3, %p4262_p11 }
  0xc5   : > { %p4265_p13 = pnand %p4264_p8, %p4258_p9 }
  0xc7   : > { %4268 = shalt.err (!%p4265_p13)
}
  0xc8   : > { %s4383_s8 = smov 48   ;;  %s4384_s21 = smov 3  }
  0xc9   : > { %3796 = dma.hbm_to_vmem [thread:$0]  (!%p5272_p2), %s4711_s18, 96, %s4713_s13, %s4621_s10, %s4383_s8, %s4383_s8, %s4384_s21  }
  0xca   : > { %s4745_s30 = scalar_lea.hbm %s5218_s7, %s3751_s4  ;;  %s619_s19 = scalar_lea.vmem [#allocation8], %s3750_s20 }
  0xcb   : > { %s626_s2 = sshll.u32 %s619_s19, 4  ;;  %s5273_s16 = sand.u32 1, %s4365_s26   ;;  %s4749_s2 = int_to_ptr.vmem [resolvable:$true] %s626_s2 }
  0xcc   : > { %s4753_s6 = scalar_lea.sflag [#allocation9], %s5273_s16  ;;  %s4269_s12 = scalar_lea.hbm %s4745_s30, 96 }
  0xcd   : > { %p4270_p6 = scmp.ne.s32.totalorder %s4745_s30, %s4269_s12  ;;  %s4274_s11 = scalar_lea.hbm %s5218_s7, 1536 }
  0xce   : > { %p4275_p7 = scmp.lt.u32.totalorder %s4745_s30, %s5218_s7  ;;  %p4276_p10 = scmp.lt.u32.totalorder %s4274_s11, %s4269_s12 }
  0xcf   : > { %p4272_p1 = pnand %p4270_p6, %p4627_p0  ;;  %p4278_p12 = scmp.lt.u32.totalorder %s4269_s12, %s4745_s30 }
  0xd0   : > { %p4277_p4 = por %p4276_p10, %p4275_p7 }
  0xd1   : > { %p4273_p5 = pneg %p4272_p1 }
  0xd2   : > { %p4279_p9 = por %p4278_p12, %p4277_p4 }
  0xd4   : > { %p4280_p11 = pnand %p4279_p9, %p4273_p5 }
  0xd6   : > { %4283 = shalt.err (!%p4280_p11)
}
  0xd7   : > { %s4284_s20 = scalar_lea.vmem %s4749_s2, 96  ;;  %s4385_s1 = smov [#allocation8]  }
  0xd8   : > { %p4285_p3 = scmp.ne.s32.totalorder %s4749_s2, %s4284_s20  ;;  %s4289_s28 = sshll.u32 %s4385_s1, 4  ;;  %s4290_s28 = int_to_ptr.vmem [resolvable:$false] %s4289_s28 }
  0xd9   : > { %s4291_s15 = scalar_lea.vmem %s4290_s28, 192  ;;  %p4292_p6 = scmp.lt.s32.totalorder %s4749_s2, %s4290_s28 }
  0xda   : > { %p4287_p8 = pnand %p4285_p3, %p4627_p0  ;;  %p4293_p1 = scmp.lt.s32.totalorder %s4291_s15, %s4284_s20 }
  0xdc   : > { %p4288_p13 = pneg %p4287_p8  ;;  %p4294_p7 = por %p4293_p1, %p4292_p6 }
  0xde   : > { %p4295_p10 = pnand %p4294_p7, %p4288_p13 }
  0xe0   : > { %4298 = shalt.err (!%p4295_p10)
}
  0xe1   : > { %3799 = dma.hbm_to_vmem [thread:$0]  (!%p5272_p2), %s4745_s30, 96, %s4749_s2, %s4753_s6, %s4383_s8, %s4383_s8, %s4384_s21  }
  0xe2   : > { %p5274_p0 = scmp.ne.s32.totalorder %s5258_s17, 0 }
  0xe3   : > { %s640_s27 = sand.u32 (!%p5274_p0), 1, %s4349_s22   ;;  %p5275_p5 = scmp.ne.s32.totalorder (!%p5274_p0), %s5257_s0, 0 }
  0xe4   : > { %638 = sbr.rel (%p5274_p0) target bundleno = 1907 (0x773), region = 84  ;;  %s3218_s19 = sshll.u32 (!%p5274_p0), %s640_s27, 2 }
  0xe5   : > { %s641_s16 = scalar_lea.sflag (!%p5274_p0), [#allocation4], %s640_s27  ;;  %s4783_s12 = scalar_lea.vmem (!%p5274_p0), [#allocation3], %s3218_s19 }
  0xeb   : > { %4324 = dma.done.wait (%p5275_p5), %s641_s16, 64  }
  0xec   : > { %4326 = vsyncadd (%p5275_p5), %s641_s16, 4294967232  ;;  %s5276_s9 = sadd.s32 4294967295, %s4365_s26   ;;  %s3754_s8 = smul.u32 96, %s640_s27 }
  0xed   : > { %s649_s10 = sand.u32 1, %s5276_s9  }
  0xee   : > { %s650_s21 = scalar_lea.sflag [#allocation6], %s649_s10  ;;  %s4791_s17 = scalar_lea.vmem [#allocation5], %s3754_s8 }
  0xef   : > { %4328 = dma.done.wait (%p5275_p5), %s650_s21, 1632  }
  0xf0   : > { %4330 = vsyncadd (%p5275_p5), %s650_s21, 4294965664  ;;  %s3755_s30 = smul.u32 6, %s640_s27  ;;  %s668_s6 = scalar_lea.sflag [#allocation9], %s649_s10 }
  0xf2   : > { %s4797_s2 = scalar_lea.vmem [#allocation7], %s3755_s30  ;;  %s4799_s4 = scalar_lea.vmem [#allocation8], %s3755_s30 }
  0xf3   : > { %4332 = dma.done.wait (%p5275_p5), %s668_s6, 96  }
  0xf4   : > { %4334 = vsyncadd (%p5275_p5), %s668_s6, 4294967200  ;;  %p5277_p2 = scmp.ne.s32.totalorder %s5255_s29, 0 }
  0xf6   : > { %4336 = dma.done.wait (%p5277_p2), [#allocation9], 1024  }
  0xf7   : > { %4338 = vsyncadd (%p5277_p2), [#allocation9], 4294966272 }
  0xf8   : > { %4340 = dma.done.wait (%p5277_p2), [#allocation12], 12288  }
  0xf9   : > { %4342 = vsyncadd (%p5277_p2), [#allocation12], 4294955008  ;;  %p772_p4 = scmp.lt.s32.totalorder %s4357_s24, 15  ;;  %s5278_s1 = sld [smem:[#allocation23_spill]] }
  0xfa   : > { %s5279_s19 = sld [smem:[#allocation25_spill]]  ;;  %p3225_p12 = scmp.ne.s32.totalorder %s4357_s24, 0 }
  0xfb   : > { %s773_s11 = scalar_select %p772_p4, %s4357_s24, 15 }
  0xfc   : > { %790 = sbr.rel (%p3225_p12) target bundleno = 260 (0x104), region = 116  ;;  %s5280_s10 = sld [smem:[#allocation21_spill]] (!%p3225_p12)  ;;  %vm792_vm0 = vcmask (!%p3225_p12), 523264  }
  0xfd   : > { %s3417_s13 = sshll.u32 %s773_s11, 7  ;;  %s3756_s18 = smul.u32 48, %s773_s11 }
  0xff   : > { %s4818_s28 = scalar_lea.vmem %s5278_s1, %s3417_s13 }
 0x100   : > { %s4823_s16 = scalar_lea.vmem %s5279_s19, %s3756_s18 }
 0x102   : > { %v791_v0 = vld [vmem:[%s5280_s10] sm:$0xff] (!%p3225_p12) }
 0x103   : > { %793 = vst.msk [vmem:[#allocation2] sm:$0xff] %vm792_vm0, %v791_v0 }
 0x104 PF: > { %v3875_v1 = vld [vmem:[%s4818_s28 + $0x4] ss:$8 sps:$4 sm:$0xff]   ;;  %v3877_v2 = vld [vmem:[%s4818_s28] ss:$8 sps:$4 sm:$0xff]   ;;  %v4386_v3 = vmov 0   ;;  %v4387_v5 = vmov 0.0|0.0   ;;  %v806_v56 = vlaneseq }
 0x105   : > { %892 = vmatprep.mubr.bf16.mxu1 %v4386_v3  ;;  %860 = vmatprep.subr.bf16.mxu1 %v3875_v1  ;;  %v3878_v4 = vld [vmem:[%s4818_s28 + $0x14] ss:$8 sps:$4 sm:$0xff]   ;;  %v3880_v6 = vld [vmem:[%s4818_s28 + $0x10] ss:$8 sps:$4 sm:$0xff]   ;;  %v3881_v7 = vld [vmem:[%s4818_s28 + $0x24] ss:$8 sps:$4 sm:$0xff]  }
 0x106   : > { %3626 = vmatprep.subr.bf16.mxu0 %v4387_v5  ;;  %861 = vmatpush1.bf16.msra.mxu1 %v3877_v2  ;;  %v3883_v8 = vld [vmem:[%s4818_s28 + $0x20] ss:$8 sps:$4 sm:$0xff]   ;;  %v3884_v9 = vld [vmem:[%s4818_s28 + $0x34] ss:$8 sps:$4 sm:$0xff]   ;;  %v3886_v10 = vld [vmem:[%s4818_s28 + $0x30] ss:$8 sps:$4 sm:$0xff]  }
 0x107   : > { %862 = vmatprep.subr.bf16.mxu1 %v3878_v4  ;;  %v3889_v12 = vld [vmem:[%s4818_s28 + $0x44] ss:$8 sps:$4 sm:$0xff]   ;;  %s5281_s30 = sld [smem:[#allocation26_spill]]  ;;  %v3887_v16 = vld [vmem:[%s4818_s28 + $0x40] ss:$8 sps:$4 sm:$0xff]   ;;  %vm856_vm1 = vcmask 523264  }
 0x108   : > { %v3892_v18 = vld [vmem:[%s4818_s28 + $0x54] ss:$8 sps:$4 sm:$0xff]   ;;  %v3890_v19 = vld [vmem:[%s4818_s28 + $0x50] ss:$8 sps:$4 sm:$0xff]   ;;  %v3895_v20 = vld [vmem:[%s4818_s28 + $0x64] ss:$8 sps:$4 sm:$0xff]  }
 0x109   : > { %v3893_v21 = vld [vmem:[%s4818_s28 + $0x60] ss:$8 sps:$4 sm:$0xff]   ;;  %v3898_v22 = vld [vmem:[%s4818_s28 + $0x74] ss:$8 sps:$4 sm:$0xff]   ;;  %v3896_v23 = vld [vmem:[%s4818_s28 + $0x70] ss:$8 sps:$4 sm:$0xff]  }
 0x10a   : > { %863 = vmatpush1.bf16.msra.mxu1 %v3880_v6  ;;  %v794_v11 = vld [vmem:[#allocation2] sm:$0xff]  ;;  %v4388_v51 = vmov 0.0   ;;  %v3900_v52 = vld [vmem:[%s4791_s17] ss:$12 sps:$4 sm:$0xff]   ;;  %v3906_v54 = vld [vmem:[%s4791_s17 + $0x1c] ss:$12 sps:$4 sm:$0xff]  }
 0x10b   : > { %864 = vmatprep.subr.bf16.mxu1 %v3881_v7  ;;  %v803_v17 = vpack.c.bf16 %v794_v11, %v794_v11  ;;  %v3902_v53 = vld [vmem:[%s4791_s17 + $0x4] ss:$12 sps:$4 sm:$0xff]   ;;  %v4926_v57 = vshrl.u32 %v806_v56, 7  ;;  %v804_v59 = vld [vmem:[%s4783_s12] sm:$0x3]  ;;  %vm1500_vm2 = vcmask 1045504  }
 0x10c   : > { %v3904_v55 = vld [vmem:[%s4791_s17 + $0x18] ss:$12 sps:$4 sm:$0xff]   ;;  %vm1040_vm3 = vcmask 261120   ;;  %s5282_s28 = sld [smem:[#allocation22_spill]]  ;;  %vm4389_vm4 = vmmov 0   ;;  %vm1496_vm5 = vcmask 97280  }
 0x10d   : > { %v1020_v13 = vld [vmem:[%s5281_s30] sm:$0xff]  ;;  %v1021_v14 = vld [vmem:[%s5281_s30 + $0x8] sm:$0xff]  ;;  %v1022_v24 = vld [vmem:[%s5281_s30 + $0x10] sm:$0xff]  ;;  %v4929_v58 = vsub.s32 0, %v4926_v57  ;;  %v4933_v60 = vsub.s32 1, %v4926_v57  ;;  %s5283_s19 = sld [smem:[#allocation27_spill]] }
 0x10e   : > { %865 = vmatpush1.bf16.msra.mxu1 %v3883_v8  ;;  %v3627_v15 = vpack.c.bf16 %v1021_v14, %v1020_v13  ;;  %v1023_v25 = vld [vmem:[%s5281_s30 + $0x18] sm:$0xff]  ;;  %v1024_v27 = vld [vmem:[%s5281_s30 + $0x20] sm:$0xff]  ;;  %v1025_v28 = vld [vmem:[%s5281_s30 + $0x28] sm:$0xff]  ;;  %p3306_p9 = scmp.ne.s32.totalorder %s4357_s24, 15 }
 0x10f   : > { %866 = vmatprep.subr.bf16.mxu1 %v3884_v9  ;;  %v3630_v26 = vpack.c.bf16 %v1023_v25, %v1022_v24  ;;  %v3633_v29 = vpack.c.bf16 %v1025_v28, %v1024_v27  ;;  %v1026_v30 = vld [vmem:[%s5281_s30 + $0x30] sm:$0xff]  ;;  %v1027_v31 = vld [vmem:[%s5281_s30 + $0x38] sm:$0xff]  ;;  %v1028_v33 = vld [vmem:[%s5281_s30 + $0x40] sm:$0xff]  ;;  %v809_v61 = vrot.slane %v804_v59, %v4929_v58  ;;  %v813_v62 = vrot.slane %v804_v59, %v4933_v60  ;;  %s5284_s10 = sld [smem:[#allocation29_spill]] (!%p3306_p9)  ;;  %s5285_s6 = sld [smem:[#allocation31_spill]] (!%p3306_p9) }
 0x110   : > { %3628 = vmatpush1.bf16.msra.mxu0 %v3627_v15  ;;  %v3636_v32 = vpack.c.bf16 %v1027_v31, %v1026_v30  ;;  %v1029_v34 = vld [vmem:[%s5281_s30 + $0x48] sm:$0xff]  ;;  %v1030_v36 = vld [vmem:[%s5281_s30 + $0x50] sm:$0xff]  ;;  %v1031_v37 = vld [vmem:[%s5281_s30 + $0x58] sm:$0xff]  ;;  %s5286_s18 = sld [smem:[#allocation32_spill]] (!%p3306_p9)  ;;  %s5287_s1 = sld [smem:[#allocation33_spill]] (!%p3306_p9) }
 0x111   : > { %3629 = vmatprep.subr.bf16.mxu0 %v4387_v5  ;;  %v3639_v35 = vpack.c.bf16 %v1029_v34, %v1028_v33  ;;  %v3642_v38 = vpack.c.bf16 %v1031_v37, %v1030_v36  ;;  %v1032_v39 = vld [vmem:[%s5281_s30 + $0x60] sm:$0xff]  ;;  %v1033_v40 = vld [vmem:[%s5281_s30 + $0x68] sm:$0xff]  ;;  %v1034_v42 = vld [vmem:[%s5281_s30 + $0x70] sm:$0xff] }
 0x112   : > { %867 = vmatpush1.bf16.msra.mxu1 %v3886_v10  ;;  %v3645_v41 = vpack.c.bf16 %v1033_v40, %v1032_v39  ;;  %v1035_v43 = vld [vmem:[%s5281_s30 + $0x78] sm:$0xff]  ;;  %v1036_v45 = vld [vmem:[%s5281_s30 + $0x80] sm:$0xff]  ;;  %v1037_v46 = vld [vmem:[%s5281_s30 + $0x88] sm:$0xff] }
 0x113   : > { %963 = vmatprep.subr.bf16.mxu1 %v3889_v12  ;;  %v3648_v44 = vpack.c.bf16 %v1035_v43, %v1034_v42  ;;  %v3651_v47 = vpack.c.bf16 %v1037_v46, %v1036_v45  ;;  %v1038_v48 = vld [vmem:[%s5281_s30 + $0x90] sm:$0xff]  ;;  %v1039_v49 = vld [vmem:[%s5281_s30 + $0x98] sm:$0xff]  ;;  %v3243_v15 = vld [vmem:[%s4783_s12 + $0x2] sm:$0x3]  ;;  %v5002_v46 = vsub.s32 2, %v4926_v57 }
 0x114   : > { %3631 = vmatpush1.bf16.msra.mxu0 %v3630_v26  ;;  %v3654_v50 = vpack.c.bf16 %v1039_v49, %v1038_v48  ;;  %v3899_v25 = vld [vmem:[%s4823_s16 + $0x8] ss:$12 sps:$4 sm:$0x3f]   ;;  %v1460_v28 = vld [vmem:[%s5282_s28] sm:$0xff] }
 0x115   : > { %3234 = vmatmul.mubr.msk.bf16.vlgmr.msra.gmra.mrb[0].mxu1 %vm856_vm1, %v803_v17  ;;  %3632 = vmatprep.subr.bf16.mxu0 %v4387_v5  ;;  %v1508_v30 = vsel %vm1500_vm2, %v3899_v25, 0  ;;  %v3903_v31 = vld [vmem:[%s4823_s16 + $0x20] ss:$12 sps:$4 sm:$0x3f]   ;;  %v1454_v37 = vld [vmem:[%s5283_s19 + $0x110] sm:$0xff] }
 0x116   : > { %964 = vmatpush1.bf16.msra.mxu1 %v3887_v16  ;;  %995 = vmatprep.mubr.bf16.mxu1 %v4386_v3  ;;  %v1634_v33 = vsel %vm1500_vm2, %v3903_v31, 0  ;;  %v1452_v34 = vld [vmem:[%s5283_s19 + $0x100] sm:$0xff]  ;;  %v1458_v43 = vld [vmem:[%s5283_s19 + $0x130] sm:$0xff] }
 0x117   : > { %965 = vmatprep.subr.bf16.mxu1 %v3892_v18  ;;  %v916_v18 = vrot.slane %v3243_v15, %v4929_v58  ;;  %v1456_v40 = vld [vmem:[%s5283_s19 + $0x120] sm:$0xff]  ;;  %v1438_v31 = vld [vmem:[%s5283_s19 + $0x90] sm:$0xff] }
 0x118   : > { %3634 = vmatpush1.bf16.msra.mxu0 %v3633_v29  ;;  %v3907_v49 = vld [vmem:[%s4791_s17 + $0x8] ss:$12 sps:$4 sm:$0xff]  }
 0x119   : > { %3635 = vmatprep.subr.bf16.mxu0 %v4387_v5  ;;  %v3911_v56 = vld [vmem:[%s4791_s17 + $0x34] ss:$12 sps:$4 sm:$0xff]  }
 0x11a   : > { %966 = vmatpush1.bf16.msra.mxu1 %v3890_v19  ;;  %v920_v19 = vrot.slane %v3243_v15, %v4933_v60  ;;  %v3919_v15 = vld [vmem:[%s4823_s16] ss:$12 sps:$4 sm:$0x3f]  }
 0x11b   : > { %967 = vmatprep.subr.bf16.mxu1 %v3895_v20 }
 0x11c   : > { %3637 = vmatpush1.bf16.msra.mxu0 %v3636_v32  ;;  %v4947_v32 = vpack.c.bf16 %v1460_v28, %v1460_v28 }
 0x11d   : > { %3638 = vmatprep.subr.bf16.mxu0 %v4387_v5 }
 0x11e   : > { %968 = vmatpush1.bf16.msra.mxu1 %v3893_v21 }
 0x11f   : > { %969 = vmatprep.subr.bf16.mxu1 %v3898_v22 }
 0x120   : > { %3640 = vmatpush1.bf16.msra.mxu0 %v3639_v35  ;;  %v1453_v35 = vld [vmem:[%s5283_s19 + $0x108] sm:$0xff] }
 0x121   : > { %3641 = vmatprep.subr.bf16.mxu0 %v4387_v5  ;;  %v4968_v36 = vpack.c.bf16 %v1453_v35, %v1452_v34  ;;  %v1422_v34 = vld [vmem:[%s5283_s19 + $0x10] sm:$0xff]  ;;  %v1423_v35 = vld [vmem:[%s5283_s19 + $0x18] sm:$0xff] }
 0x122   : > { %970 = vmatpush1.bf16.msra.mxu1 %v3896_v23 }
 0x123   : > { %1175 = vmatprep.subr.bf16.mxu1 %v3902_v53 }
 0x124   : > { %3643 = vmatpush1.bf16.msra.mxu0 %v3642_v38  ;;  %v1455_v38 = vld [vmem:[%s5283_s19 + $0x118] sm:$0xff] }
 0x125   : > { %3252 = vmatmul.mubr.msk.bf16.vlgmr.msra.gmra.mrb[4].mxu1 %vm856_vm1, %v803_v17  ;;  %3644 = vmatprep.subr.bf16.mxu0 %v4387_v5  ;;  %v4977_v39 = vpack.c.bf16 %v1455_v38, %v1454_v37  ;;  %v3662_v37 = vpack.c.bf16 %v1423_v35, %v1422_v34  ;;  %v1440_v38 = vld [vmem:[%s5283_s19 + $0xa0] sm:$0xff] }
 0x126   : > { %1207 = vmatprep.mubr.bf16.mxu1 %v4386_v3  ;;  %1176 = vmatpush1.bf16.msra.mxu1 %v3900_v52 }
 0x127   : > { %1177 = vmatprep.subr.bf16.mxu1 %v3906_v54  ;;  %v3908_v54 = vld [vmem:[%s4791_s17 + $0x20] ss:$12 sps:$4 sm:$0xff]  }
 0x128   : > { %3646 = vmatpush1.bf16.msra.mxu0 %v3645_v41  ;;  %v1457_v41 = vld [vmem:[%s5283_s19 + $0x128] sm:$0xff] }
 0x129   : > { %3647 = vmatprep.subr.bf16.mxu0 %v4387_v5  ;;  %v4987_v42 = vpack.c.bf16 %v1457_v41, %v1456_v40  ;;  %v1441_v40 = vld [vmem:[%s5283_s19 + $0xa8] sm:$0xff] }
 0x12a   : > { %1178 = vmatpush1.bf16.msra.mxu1 %v3904_v55  ;;  %v3664_v41 = vpack.c.bf16 %v1441_v40, %v1440_v38 }
 0x12b   : > { %3560 = vmatprep.subr.bf16.mxu1 %v4388_v51 }
 0x12c   : > { %3649 = vmatpush1.bf16.msra.mxu0 %v3648_v44  ;;  %v1459_v44 = vld [vmem:[%s5283_s19 + $0x138] sm:$0xff] }
 0x12d   : > { %3650 = vmatprep.subr.bf16.mxu0 %v4387_v5  ;;  %v4997_v45 = vpack.c.bf16 %v1459_v44, %v1458_v43  ;;  %v1424_v43 = vld [vmem:[%s5283_s19 + $0x20] sm:$0xff]  ;;  %v1425_v44 = vld [vmem:[%s5283_s19 + $0x28] sm:$0xff] }
 0x130   : > { %3652 = vmatpush1.bf16.msra.mxu0 %v3651_v47  ;;  %v5005_v47 = vld [vmem:[%s4799_s4] sm:$0x7] }
 0x131   : > { %3653 = vmatprep.subr.bf16.mxu0 %v4387_v5  ;;  %v1479_v53 = vrot.slane %v5005_v47, %v5002_v46 }
 0x134   : > { %3655 = vmatpush1.bf16.msra.mxu0 %v3654_v50 }
 0x135   : > { %3576 = vmatprep.subr.bf16.mxu0 %v4388_v51 }
 0x1e8   : > { %v894_v63 = vpop.f32.mrb[0].mxu1 }
 0x1e9   : > { %v895_v0 = vadd.f32 %v894_v63, %v809_v61  ;;  %v896_v1 = vpop.f32.mrb[1].mxu1 }
 0x1ea   : > { %v897_v2 = vadd.f32 %v896_v1, %v813_v62  ;;  %v898_v4 = vpop.f32.mrb[2].mxu1  ;;  %v3909_v1 = vld [vmem:[%s4791_s17 + $0x30] ss:$12 sps:$4 sm:$0xff]  }
 0x1eb   : > { %v3253_v6 = vmul.f32 -1.442695, %v895_v0  ;;  %v899_v7 = vpop.f32.mrb[3].mxu1  ;;  %v3912_v4 = vld [vmem:[%s4791_s17 + $0x48] ss:$12 sps:$4 sm:$0xff]  }
 0x1ec   : > { %v3254_v8 = vmul.f32 -1.442695, %v897_v2  ;;  %v3914_v2 = vld [vmem:[%s4791_s17 + $0x4c] ss:$12 sps:$4 sm:$0xff]  }
 0x1ed   : > { %3923 = vpow2.f32 %v3253_v6 }
 0x1ee   : > { %3925 = vpow2.f32 %v3254_v8 }
 0x1f7   : > { %v3924_v9 = vpop.eup %3923 }
 0x1f8   : > { %v3926_v10 = vpop.eup %3925  ;;  %v1010_v11 = vadd.f32 1.0, %v3924_v9  ;;  %v997_v12 = vpop.f32.mrb[4].mxu1 }
 0x1f9   : > { %v1011_v13 = vadd.f32 1.0, %v3926_v10  ;;  %v999_v14 = vpop.f32.mrb[5].mxu1  ;;  %v998_v20 = vadd.f32 %v997_v12, %v916_v18  ;;  %v3915_v10 = vld [vmem:[%s4791_s17 + $0x38] ss:$12 sps:$4 sm:$0xff]   ;;  %v3916_v12 = vld [vmem:[%s4791_s17 + $0x50] ss:$12 sps:$4 sm:$0xff]  }
 0x1fa   : > { %3927 = vrcp.f32 %v1010_v11  ;;  %v1001_v16 = vpop.f32.mrb[6].mxu1  ;;  %v1000_v21 = vadd.f32 %v999_v14, %v920_v19  ;;  %v3917_v14 = vld [vmem:[%s4823_s16 + $0x4] ss:$12 sps:$4 sm:$0x3f]  }
 0x1fb   : > { %3929 = vrcp.f32 %v1011_v13  ;;  %v1002_v17 = vpop.f32.mrb[7].mxu1  ;;  %v5031_v16 = vld [vmem:[%s4799_s4 + $0x3] sm:$0x7] }
 0x1fc   : > { %v1502_v17 = vsel %vm1500_vm2, %v3919_v15, 0  ;;  %v3920_v18 = vld [vmem:[%s4823_s16 + $0x1c] ss:$12 sps:$4 sm:$0x3f]   ;;  %v1610_v19 = vrot.slane %v5031_v16, %v5002_v46  ;;  %v1450_v15 = vld [vmem:[%s5283_s19 + $0xf0] sm:$0xff] }
 0x204   : > { %v3928_v22 = vpop.eup %3927 }
 0x205   : > { %v3930_v23 = vpop.eup %3929  ;;  %v1016_v24 = vmul.f32 %v3928_v22, %v998_v20  ;;  %v3922_v20 = vld [vmem:[%s4823_s16 + $0x18] ss:$12 sps:$4 sm:$0x3f]  }
 0x206   : > { %v1017_v26 = vmul.f32 %v3930_v23, %v1000_v21  ;;  %v1628_v23 = vsel %vm1500_vm2, %v3922_v20, 0  ;;  %v1435_v20 = vld [vmem:[%s5283_s19 + $0x78] sm:$0xff] }
 0x207   : > { %v1018_v29 = vmax.f32 %v1016_v24, 0.0 }
 0x208   : > { %v1019_v27 = vmax.f32 %v1017_v26, 0.0  ;;  %v1436_v26 = vld [vmem:[%s5283_s19 + $0x80] sm:$0xff] }
 0x20a   : > { %3255 = vmatprep.mubr.msk.f32.mxu0 %vm1040_vm3, %v1019_v27  ;;  %v1437_v27 = vld [vmem:[%s5283_s19 + $0x88] sm:$0xff] }
 0x20b   : > { %1109 = vmatmul.mubr.f32.vlgmr.msra.gmra.mrb[0].mxu0 %v1018_v29  ;;  %v3656_v28 = vpack.c.bf16 %v1437_v27, %v1436_v26  ;;  %v1420_v29 = vld [vmem:[%s5283_s19] sm:$0xff] }
 0x20c   : > { %3577 = vmatpush3.bf16.msra.mxu0 %v1508_v30  ;;  %3578 = vmatprep.mubr.msk.bf16.mxu0 %vm4389_vm4, %v4388_v51 }
 0x20d   : > { %3582 = vmatprep.subr.bf16.mxu0 %v4388_v51 }
 0x20f   : > { %3579 = vmatmul.mubr.msk.bf16.vlgmr.msra.gmra.mrb[4].mxu0 %vm1496_vm5, %v4947_v32 }
 0x210   : > { %3583 = vmatpush3.bf16.msra.mxu0 %v1634_v33  ;;  %3584 = vmatprep.mubr.msk.bf16.mxu0 %vm4389_vm4, %v4388_v51 }
 0x211   : > { %3688 = vmatprep.subr.bf16.mxu0 %v4387_v5 }
 0x217   : > { %3585 = vmatmul.mubr.msk.bf16.vlgmr.msra.gmra.mrb[8].mxu0 %vm1496_vm5, %v4947_v32 }
 0x218   : > { %3604 = vmatprep.mubr.msk.f32.mxu0 %vm4389_vm4, %v4388_v51  ;;  %3690 = vmatpush3.bf16.msra.mxu0 %v4968_v36 }
 0x219   : > { %3691 = vmatprep.subr.bf16.mxu0 %v4387_v5 }
 0x21c   : > { %3693 = vmatpush3.bf16.msra.mxu0 %v4977_v39 }
 0x21d   : > { %3694 = vmatprep.subr.bf16.mxu0 %v4387_v5 }
 0x220   : > { %3696 = vmatpush3.bf16.msra.mxu0 %v4987_v42 }
 0x221   : > { %3697 = vmatprep.subr.bf16.mxu0 %v4387_v5 }
 0x224   : > { %3699 = vmatpush3.bf16.msra.mxu0 %v4997_v45 }
 0x225   : > { %3701 = vmatprep.subr.bf16.mxu0 %v3656_v28 }
 0x2de   : > { %v1110_v48 = vpop.f32.mrb[0].mxu0 }
 0x2df   : > { %v1122_v50 = vpack.c.bf16 %v1110_v48, %v1110_v48  ;;  %v1112_v52 = vpop.f32.mrb[1].mxu0  ;;  %v3666_v48 = vpack.c.bf16 %v1425_v44, %v1424_v43 }
 0x2e1   : > { %3262 = vmatmul.mubr.msk.bf16.vlgmr.msra.gmra.mrb[8].mxu1 %vm1040_vm3, %v1122_v50 }
 0x2e2   : > { %3561 = vmatpush3.bf16.msra.mxu1 %v3907_v49  ;;  %3564 = vmatprep.mubr.msk.bf16.mxu1 %vm4389_vm4, %v4388_v51  ;;  %v1585_v55 = vpop.f32.mrb[4].mxu0  ;;  %v1442_v49 = vld [vmem:[%s5283_s19 + $0xb0] sm:$0xff] }
 0x2e3   : > { %3562 = vmatprep.subr.bf16.mxu1 %v4388_v51  ;;  %v1586_v59 = vadd.f32 %v1585_v55, %v1479_v53  ;;  %v3580_v61 = vpop.f32.mrb[5].mxu0  ;;  %v1426_v53 = vld [vmem:[%s5283_s19 + $0x30] sm:$0xff] }
 0x2e4   : > { %v1588_v62 = vpop.f32.mrb[6].mxu0 }
 0x2e5   : > { %v3303_v63 = vmul.f32 -1.442695, %v1586_v59  ;;  %v3581_v0 = vpop.f32.mrb[7].mxu0  ;;  %v1445_v59 = vld [vmem:[%s5283_s19 + $0xc8] sm:$0xff]  ;;  %v1428_v62 = vld [vmem:[%s5283_s19 + $0x40] sm:$0xff] }
 0x2e6   : > { %3563 = vmatpush3.bf16.msra.mxu1 %v3908_v54  ;;  %v1427_v54 = vld [vmem:[%s5283_s19 + $0x38] sm:$0xff] }
 0x2e7   : > { %1315 = vmatprep.subr.bf16.mxu1 %v3911_v56  ;;  %3931 = vpow2.f32 %v3303_v63  ;;  %v3670_v55 = vpack.c.bf16 %v1427_v54, %v1426_v53  ;;  %v1444_v56 = vld [vmem:[%s5283_s19 + $0xc0] sm:$0xff]  ;;  %v1429_v63 = vld [vmem:[%s5283_s19 + $0x48] sm:$0xff]  ;;  %v3272_v54 = vld [vmem:[%s4797_s2 + $0x3] sm:$0x7] }
 0x2e8   : > { %v3672_v61 = vpack.c.bf16 %v1445_v59, %v1444_v56  ;;  %v3674_v0 = vpack.c.bf16 %v1429_v63, %v1428_v62  ;;  %v1271_v56 = vrot.slane %v3272_v54, %v4929_v58 }
 0x2e9   : > { %3565 = vmatmul.mubr.msk.bf16.vlgmr.msra.gmra.mrb[12].mxu1 %vm1040_vm3, %v1122_v50 }
 0x2ea   : > { %1316 = vmatpush1.bf16.msra.mxu1 %v3909_v1  ;;  %1347 = vmatprep.mubr.bf16.mxu1 %v4386_v3  ;;  %v1711_v6 = vpop.f32.mrb[8].mxu0  ;;  %v1446_v1 = vld [vmem:[%s5283_s19 + $0xd0] sm:$0xff] }
 0x2eb   : > { %1317 = vmatprep.subr.bf16.mxu1 %v3914_v2  ;;  %v3586_v7 = vpop.f32.mrb[9].mxu0  ;;  %v1712_v21 = vadd.f32 %v1711_v6, %v1610_v19  ;;  %v1447_v2 = vld [vmem:[%s5283_s19 + $0xd8] sm:$0xff]  ;;  %v1430_v6 = vld [vmem:[%s5283_s19 + $0x50] sm:$0xff] }
 0x2ec   : > { %v1714_v8 = vpop.f32.mrb[10].mxu0  ;;  %v1431_v7 = vld [vmem:[%s5283_s19 + $0x58] sm:$0xff]  ;;  %v1434_v19 = vld [vmem:[%s5283_s19 + $0x70] sm:$0xff] }
 0x2ed   : > { %v3587_v9 = vpop.f32.mrb[11].mxu0  ;;  %v3678_v8 = vpack.c.bf16 %v1431_v7, %v1430_v6 }
 0x2ee   : > { %1318 = vmatpush1.bf16.msra.mxu1 %v3912_v4  ;;  %v3676_v4 = vpack.c.bf16 %v1447_v2, %v1446_v1  ;;  %v1448_v9 = vld [vmem:[%s5283_s19 + $0xe0] sm:$0xff] }
 0x2ef   : > { %3568 = vmatprep.subr.bf16.mxu1 %v4388_v51 }
 0x2f1   : > { %v3932_v11 = vpop.eup %3931  ;;  %3279 = vmatmul.mubr.msk.bf16.vlgmr.msra.gmra.mrb[16].mxu1 %vm1040_vm3, %v1122_v50 }
 0x2f2   : > { %3569 = vmatpush3.bf16.msra.mxu1 %v3915_v10  ;;  %3572 = vmatprep.mubr.msk.bf16.mxu1 %vm4389_vm4, %v4388_v51  ;;  %v1728_v13 = vadd.f32 1.0, %v3932_v11  ;;  %v1449_v10 = vld [vmem:[%s5283_s19 + $0xe8] sm:$0xff] }
 0x2f3   : > { %3570 = vmatprep.subr.bf16.mxu1 %v4388_v51  ;;  %v3680_v11 = vpack.c.bf16 %v1449_v10, %v1448_v9  ;;  %v1471_v9 = vrot.slane %v5005_v47, %v4929_v58 }
 0x2f4   : > { %3933 = vrcp.f32 %v1728_v13  ;;  %v1433_v13 = vld [vmem:[%s5283_s19 + $0x68] sm:$0xff] }
 0x2f6   : > { %3571 = vmatpush3.bf16.msra.mxu1 %v3916_v12  ;;  %v1432_v12 = vld [vmem:[%s5283_s19 + $0x60] sm:$0xff] }
 0x2f7   : > { %3287 = vmatprep.subr.msk.bf16.mxu1 %vm1500_vm2, %v3917_v14  ;;  %v3682_v14 = vpack.c.bf16 %v1433_v13, %v1432_v12  ;;  %v1279_v12 = vrot.slane %v3272_v54, %v5002_v46 }
 0x2f9   : > { %3573 = vmatmul.mubr.msk.bf16.vlgmr.msra.gmra.mrb[20].mxu1 %vm1040_vm3, %v1122_v50  ;;  %v1443_v50 = vld [vmem:[%s5283_s19 + $0xb8] sm:$0xff] }
 0x2fa   : > { %1511 = vmatpush1.bf16.msra.mxu1 %v1502_v17  ;;  %1542 = vmatprep.mubr.bf16.mxu1 %v4386_v3  ;;  %v3668_v52 = vpack.c.bf16 %v1443_v50, %v1442_v49  ;;  %v1451_v17 = vld [vmem:[%s5283_s19 + $0xf8] sm:$0xff] }
 0x2fb   : > { %3298 = vmatprep.subr.msk.bf16.mxu1 %vm1500_vm2, %v3920_v18  ;;  %v3684_v18 = vpack.c.bf16 %v1451_v17, %v1450_v15 }
 0x2fe   : > { %v3934_v22 = vpop.eup %3933 }
 0x2ff   : > { %v1737_v24 = vmul.f32 %v3934_v22, %v1712_v21  ;;  %v3686_v21 = vpack.c.bf16 %v1435_v20, %v1434_v19  ;;  %v1123_v22 = vld [vmem:[%s4797_s2] sm:$0x7] }
 0x301   : > { %3288 = vmatmul.mubr.msk.bf16.vlgmr.msra.gmra.mrb[24].mxu1 %vm1496_vm5, %v4947_v32  ;;  %v1740_v25 = vmax.f32 %v1737_v24, 0.0  ;;  %v1132_v24 = vrot.slane %v1123_v22, %v4933_v60 }
 0x302   : > { %1637 = vmatpush1.bf16.msra.mxu1 %v1628_v23  ;;  %1668 = vmatprep.mubr.bf16.mxu1 %v4386_v3  ;;  %v1421_v3 = vld [vmem:[%s5283_s19 + $0x8] sm:$0xff]  ;;  %v1128_v23 = vrot.slane %v1123_v22, %v4929_v58 }
 0x303   : > { %3605 = vmatmul.mubr.msk.f32.vlgmr.msra.gmra.mrb[2].mxu0 %vm856_vm1, %v1740_v25  ;;  %v3658_v30 = vpack.c.bf16 %v1421_v3, %v1420_v29  ;;  %3657 = vmatprep.subr.bf16.mxu1 %v3656_v28 }
 0x305   : > { %3703 = vmatpush3.bf16.msra.mxu0 %v3658_v30 }
 0x309   : > { %3299 = vmatmul.mubr.msk.bf16.vlgmr.msra.gmra.mrb[28].mxu1 %vm1496_vm5, %v4947_v32  ;;  %v1439_v32 = vld [vmem:[%s5283_s19 + $0x98] sm:$0xff] }
 0x30a   : > { %3659 = vmatpush3.bf16.msra.mxu1 %v3658_v30  ;;  %v3660_v33 = vpack.c.bf16 %v1439_v32, %v1438_v31  ;;  %v1136_v32 = vrot.slane %v1123_v22, %v5002_v46 }
 0x30c   : > { %3705 = vmatprep.subr.bf16.mxu0 %v3660_v33  ;;  %3661 = vmatprep.subr.bf16.mxu1 %v3660_v33 }
 0x30d   : > { %3707 = vmatpush3.bf16.msra.mxu0 %v3662_v37 }
 0x30e   : > { %3663 = vmatpush3.bf16.msra.mxu1 %v3662_v37  ;;  %3709 = vmatprep.subr.bf16.mxu0 %v3664_v41 }
 0x30f   : > { %3665 = vmatprep.subr.bf16.mxu1 %v3664_v41 }
 0x311   : > { %3711 = vmatpush3.bf16.msra.mxu0 %v3666_v48 }
 0x312   : > { %3667 = vmatpush3.bf16.msra.mxu1 %v3666_v48  ;;  %3713 = vmatprep.subr.bf16.mxu0 %v3668_v52 }
 0x313   : > { %3669 = vmatprep.subr.bf16.mxu1 %v3668_v52 }
 0x315   : > { %3715 = vmatpush3.bf16.msra.mxu0 %v3670_v55 }
 0x316   : > { %3671 = vmatpush3.bf16.msra.mxu1 %v3670_v55  ;;  %3717 = vmatprep.subr.bf16.mxu0 %v3672_v61 }
 0x317   : > { %3673 = vmatprep.subr.bf16.mxu1 %v3672_v61  ;;  %v1275_v61 = vrot.slane %v3272_v54, %v4933_v60 }
 0x319   : > { %3719 = vmatpush3.bf16.msra.mxu0 %v3674_v0 }
 0x31a   : > { %3675 = vmatpush3.bf16.msra.mxu1 %v3674_v0  ;;  %3721 = vmatprep.subr.bf16.mxu0 %v3676_v4 }
 0x31b   : > { %3677 = vmatprep.subr.bf16.mxu1 %v3676_v4 }
 0x31d   : > { %3723 = vmatpush3.bf16.msra.mxu0 %v3678_v8 }
 0x31e   : > { %3679 = vmatpush3.bf16.msra.mxu1 %v3678_v8  ;;  %3725 = vmatprep.subr.bf16.mxu0 %v3680_v11 }
 0x31f   : > { %3681 = vmatprep.subr.bf16.mxu1 %v3680_v11  ;;  %v1475_v11 = vrot.slane %v5005_v47, %v4933_v60 }
 0x321   : > { %3727 = vmatpush3.bf16.msra.mxu0 %v3682_v14 }
 0x322   : > { %3683 = vmatpush3.bf16.msra.mxu1 %v3682_v14  ;;  %3729 = vmatprep.subr.bf16.mxu0 %v3684_v18 }
 0x323   : > { %3685 = vmatprep.subr.bf16.mxu1 %v3684_v18 }
 0x325   : > { %3731 = vmatpush3.bf16.msra.mxu0 %v3686_v21 }
 0x326   : > { %3687 = vmatpush3.bf16.msra.mxu1 %v3686_v21  ;;  %3732 = vmatprep.subr.bf16.mxu0 %v4387_v5 }
 0x3b4   : > { %v1209_v25 = vpop.f32.mrb[8].mxu1 }
 0x3b5   : > { %v1210_v26 = vadd.f32 %v1209_v25, %v1128_v23  ;;  %v1211_v27 = vpop.f32.mrb[9].mxu1 }
 0x3b6   : > { %v1212_v28 = vadd.f32 %v1211_v27, %v1132_v24  ;;  %v1213_v29 = vpop.f32.mrb[10].mxu1 }
 0x3b7   : > { %v3281_v3 = vmul.f32 -1.442695, %v1210_v26  ;;  %v1214_v30 = vpop.f32.mrb[11].mxu1 }
 0x3b8   : > { %v3282_v31 = vmul.f32 -1.442695, %v1212_v28 }
 0x3b9   : > { %3935 = vpow2.f32 %v3281_v3 }
 0x3ba   : > { %3937 = vpow2.f32 %v3282_v31 }
 0x3bc   : > { %v1250_v33 = vpop.f32.mrb[12].mxu1 }
 0x3bd   : > { %v1251_v34 = vadd.f32 %v1250_v33, %v1136_v32  ;;  %v3566_v35 = vpop.f32.mrb[13].mxu1  ;;  %v1606_v32 = vrot.slane %v5031_v16, %v4933_v60 }
 0x3be   : > { %v1253_v37 = vpop.f32.mrb[14].mxu1 }
 0x3bf   : > { %v3283_v38 = vmul.f32 -1.442695, %v1251_v34  ;;  %v3567_v40 = vpop.f32.mrb[15].mxu1 }
 0x3c1   : > { %3939 = vpow2.f32 %v3283_v38 }
 0x3c3   : > { %v3936_v41 = vpop.eup %3935 }
 0x3c4   : > { %v3938_v43 = vpop.eup %3937  ;;  %v1405_v44 = vadd.f32 1.0, %v3936_v41  ;;  %v1349_v48 = vpop.f32.mrb[16].mxu1 }
 0x3c5   : > { %v1406_v49 = vadd.f32 1.0, %v3938_v43  ;;  %v1351_v50 = vpop.f32.mrb[17].mxu1  ;;  %v1350_v1 = vadd.f32 %v1349_v48, %v1271_v56  ;;  %v3955_v56 = vld [vmem:[#allocation10 + $0x4] ss:$8 sps:$4 sm:$0xff] (!%p3306_p9)  }
 0x3c6   : > { %3941 = vrcp.f32 %v1405_v44  ;;  %v1353_v52 = vpop.f32.mrb[18].mxu1  ;;  %v1352_v6 = vadd.f32 %v1351_v50, %v1275_v61  ;;  %v4390_v61 = vmov (!%p3306_p9), 0  }
 0x3c7   : > { %3943 = vrcp.f32 %v1406_v49  ;;  %v1354_v53 = vpop.f32.mrb[19].mxu1 }
 0x3cb   : > { %v3940_v55 = vpop.eup %3939 }
 0x3cc   : > { %v1407_v59 = vadd.f32 1.0, %v3940_v55  ;;  %v1390_v62 = vpop.f32.mrb[20].mxu1 }
 0x3cd   : > { %v3574_v63 = vpop.f32.mrb[21].mxu1  ;;  %v1391_v21 = vadd.f32 %v1390_v62, %v1279_v12  ;;  %v3958_v62 = vld [vmem:[#allocation10 + $0x14] ss:$8 sps:$4 sm:$0xff] (!%p3306_p9)  }
 0x3ce   : > { %3945 = vrcp.f32 %v1407_v59  ;;  %v1393_v0 = vpop.f32.mrb[22].mxu1  ;;  %v3957_v59 = vld [vmem:[#allocation10] ss:$8 sps:$4 sm:$0xff] (!%p3306_p9)   ;;  %v3960_v63 = vld [vmem:[#allocation10 + $0x10] ss:$8 sps:$4 sm:$0xff] (!%p3306_p9)  }
 0x3cf   : > { %v3575_v2 = vpop.f32.mrb[23].mxu1  ;;  %v3961_v0 = vld [vmem:[#allocation10 + $0x24] ss:$8 sps:$4 sm:$0xff] (!%p3306_p9)  }
 0x3d0   : > { %v3942_v4 = vpop.eup %3941  ;;  %v3963_v2 = vld [vmem:[#allocation10 + $0x20] ss:$8 sps:$4 sm:$0xff] (!%p3306_p9)   ;;  %v3971_v12 = vld [vmem:[#allocation11 + $0xc] ss:$16 sps:$4 sm:$0xff] (!%p3306_p9)  }
 0x3d1   : > { %v3944_v7 = vpop.eup %3943  ;;  %v1414_v8 = vmul.f32 %v3942_v4, %v1350_v1  ;;  %v3967_v1 = vld [vmem:[#allocation11 + $0x4] ss:$16 sps:$4 sm:$0xff] (!%p3306_p9)  }
 0x3d2   : > { %v1415_v10 = vmul.f32 %v3944_v7, %v1352_v6  ;;  %v3964_v4 = vld [vmem:[#allocation10 + $0x34] ss:$8 sps:$4 sm:$0xff] (!%p3306_p9)   ;;  %2551 = vmatprep.subr.bf16.mxu1 (!%p3306_p9), %v3967_v1  ;;  %v3972_v6 = vld [vmem:[#allocation11] ss:$16 sps:$4 sm:$0xff] (!%p3306_p9)   ;;  %v4047_v1 = vld [vmem:[#allocation11 + $0x1a8] ss:$16 sps:$4 sm:$0xff] (!%p3306_p9)  }
 0x3d3   : > { %v1417_v15 = vmax.f32 %v1414_v8, 0.0  ;;  %v3973_v7 = vld [vmem:[#allocation11 + $0x24] ss:$16 sps:$4 sm:$0xff] (!%p3306_p9)   ;;  %v3966_v8 = vld [vmem:[#allocation10 + $0x30] ss:$8 sps:$4 sm:$0xff] (!%p3306_p9)  }
 0x3d4   : > { %v1418_v13 = vmax.f32 %v1415_v10, 0.0  ;;  %v1544_v14 = vpop.f32.mrb[24].mxu1  ;;  %v3978_v10 = vld [vmem:[#allocation11 + $0x20] ss:$16 sps:$4 sm:$0xff] (!%p3306_p9)  }
 0x3d5   : > { %v1545_v17 = vadd.f32 %v1544_v14, %v1471_v9  ;;  %v1546_v18 = vpop.f32.mrb[25].mxu1  ;;  %v3984_v14 = vld [vmem:[#allocation11 + $0x40] ss:$16 sps:$4 sm:$0xff] (!%p3306_p9)  }
 0x3d6   : > { %v1547_v19 = vadd.f32 %v1546_v18, %v1475_v11  ;;  %v1548_v20 = vpop.f32.mrb[26].mxu1  ;;  %1951 = vmatprep.mubr.f32.mxu0 %v1418_v13  ;;  %v3979_v11 = vld [vmem:[#allocation11 + $0x44] ss:$16 sps:$4 sm:$0xff] (!%p3306_p9)   ;;  %v3977_v18 = vld [vmem:[#allocation11 + $0x2c] ss:$16 sps:$4 sm:$0xff] (!%p3306_p9)  }
 0x3d7   : > { %v3301_v22 = vmul.f32 -1.442695, %v1545_v17  ;;  %v1549_v23 = vpop.f32.mrb[27].mxu1  ;;  %1952 = vmatmul.mubr.f32.vlgmr.msra.gmra.mrb[12].mxu0 %v1417_v15  ;;  %v3969_v15 = vld [vmem:[#allocation11 + $0x8] ss:$16 sps:$4 sm:$0xff] (!%p3306_p9)  }
 0x3d8   : > { %v3946_v24 = vpop.eup %3945  ;;  %v3302_v25 = vmul.f32 -1.442695, %v1547_v19  ;;  %3734 = vmatpush3.bf16.msra.mxu0 %v4968_v36  ;;  %3623 = vmatprep.mubr.msk.f32.mxu0 %vm4389_vm4, %v4388_v51  ;;  %v3985_v17 = vld [vmem:[#allocation11 + $0x64] ss:$16 sps:$4 sm:$0xff] (!%p3306_p9)   ;;  %v3975_v19 = vld [vmem:[#allocation11 + $0x28] ss:$16 sps:$4 sm:$0xff] (!%p3306_p9)  }
 0x3d9   : > { %v1416_v47 = vmul.f32 %v3946_v24, %v1391_v21  ;;  %3947 = vpow2.f32 %v3301_v22  ;;  %3735 = vmatprep.subr.bf16.mxu0 %v4387_v5  ;;  %v3990_v20 = vld [vmem:[#allocation11 + $0x60] ss:$16 sps:$4 sm:$0xff] (!%p3306_p9)   ;;  %v3991_v21 = vld [vmem:[#allocation11 + $0x84] ss:$16 sps:$4 sm:$0xff] (!%p3306_p9)   ;;  %v3983_v22 = vld [vmem:[#allocation11 + $0x4c] ss:$16 sps:$4 sm:$0xff] (!%p3306_p9)  }
 0x3da   : > { %3949 = vpow2.f32 %v3302_v25  ;;  %v3996_v23 = vld [vmem:[#allocation11 + $0x80] ss:$16 sps:$4 sm:$0xff] (!%p3306_p9)   ;;  %v3981_v24 = vld [vmem:[#allocation11 + $0x48] ss:$16 sps:$4 sm:$0xff] (!%p3306_p9)   ;;  %v3997_v25 = vld [vmem:[#allocation11 + $0xa4] ss:$16 sps:$4 sm:$0xff] (!%p3306_p9)  }
 0x3db   : > { %v1419_v30 = vmax.f32 %v1416_v47, 0.0  ;;  %v3989_v47 = vld [vmem:[#allocation11 + $0x6c] ss:$16 sps:$4 sm:$0xff] (!%p3306_p9)  }
 0x3dc   : > { %3737 = vmatpush3.bf16.msra.mxu0 %v4977_v39  ;;  %v1670_v26 = vpop.f32.mrb[28].mxu1  ;;  %v1602_v39 = vrot.slane %v5031_v16, %v4929_v58 }
 0x3dd   : > { %3738 = vmatprep.subr.bf16.mxu0 %v4387_v5  ;;  %v1672_v27 = vpop.f32.mrb[29].mxu1 }
 0x3de   : > { %v1674_v28 = vpop.f32.mrb[30].mxu1  ;;  %v1673_v33 = vadd.f32 %v1672_v27, %v1606_v32  ;;  %v4002_v27 = vld [vmem:[#allocation11 + $0xa0] ss:$16 sps:$4 sm:$0xff] (!%p3306_p9)   ;;  %v4015_v32 = vld [vmem:[#allocation11 + $0x104] ss:$16 sps:$4 sm:$0xff] (!%p3306_p9)  }
 0x3df   : > { %v1675_v29 = vpop.f32.mrb[31].mxu1  ;;  %v4003_v28 = vld [vmem:[#allocation11 + $0xc4] ss:$16 sps:$4 sm:$0xff] (!%p3306_p9)  }
 0x3e0   : > { %3740 = vmatpush3.bf16.msra.mxu0 %v4987_v42  ;;  %v1671_v42 = vadd.f32 %v1670_v26, %v1602_v39  ;;  %v3987_v26 = vld [vmem:[#allocation11 + $0x68] ss:$16 sps:$4 sm:$0xff] (!%p3306_p9)   ;;  %v3995_v29 = vld [vmem:[#allocation11 + $0x8c] ss:$16 sps:$4 sm:$0xff] (!%p3306_p9)   ;;  %v4014_v39 = vld [vmem:[#allocation11 + $0xe0] ss:$16 sps:$4 sm:$0xff] (!%p3306_p9)  }
 0x3e1   : > { %3741 = vmatprep.subr.bf16.mxu0 %v4387_v5 }
 0x3e3   : > { %v3948_v36 = vpop.eup %3947 }
 0x3e4   : > { %v3950_v3 = vpop.eup %3949  ;;  %v1726_v51 = vadd.f32 1.0, %v3948_v36  ;;  %3743 = vmatpush3.bf16.msra.mxu0 %v4997_v45  ;;  %v4008_v36 = vld [vmem:[#allocation11 + $0xc0] ss:$16 sps:$4 sm:$0xff] (!%p3306_p9)  }
 0x3e5   : > { %v1727_v31 = vadd.f32 1.0, %v3950_v3  ;;  %2100 = vmatprep.subr.bf16.mxu0 (!%p3306_p9), %v3955_v56  ;;  %v3993_v3 = vld [vmem:[#allocation11 + $0x88] ss:$16 sps:$4 sm:$0xff] (!%p3306_p9)   ;;  %v4037_v56 = vld [vmem:[#allocation11 + $0x16c] ss:$16 sps:$4 sm:$0xff] (!%p3306_p9)  }
 0x3e6   : > { %3951 = vrcp.f32 %v1726_v51  ;;  %v4009_v51 = vld [vmem:[#allocation11 + $0xe4] ss:$16 sps:$4 sm:$0xff] (!%p3306_p9)  }
 0x3e7   : > { %3953 = vrcp.f32 %v1727_v31  ;;  %3624 = vmatmul.mubr.msk.f32.vlgmr.msra.gmra.mrb[2].mxu0 %vm856_vm1, %v1419_v30  ;;  %v4001_v30 = vld [vmem:[#allocation11 + $0xac] ss:$16 sps:$4 sm:$0xff] (!%p3306_p9)   ;;  %v3999_v31 = vld [vmem:[#allocation11 + $0xa8] ss:$16 sps:$4 sm:$0xff] (!%p3306_p9)  }
 0x3e8   : > { %2132 = vmatprep.mubr.bf16.mxu0 (!%p3306_p9), %v4390_v61  ;;  %2101 = vmatpush1.bf16.msra.mxu0 (!%p3306_p9), %v3957_v59  ;;  %v4050_v59 = vld [vmem:[#allocation11 + $0x1a0] ss:$16 sps:$4 sm:$0xff] (!%p3306_p9)   ;;  %v4035_v61 = vld [vmem:[#allocation11 + $0x168] ss:$16 sps:$4 sm:$0xff] (!%p3306_p9)  }
 0x3e9   : > { %2102 = vmatprep.subr.bf16.mxu0 (!%p3306_p9), %v3958_v62  ;;  %v4043_v62 = vld [vmem:[#allocation11 + $0x18c] ss:$16 sps:$4 sm:$0xff] (!%p3306_p9)  }
 0x3ec   : > { %2103 = vmatpush1.bf16.msra.mxu0 (!%p3306_p9), %v3960_v63  ;;  %v4041_v63 = vld [vmem:[#allocation11 + $0x188] ss:$16 sps:$4 sm:$0xff] (!%p3306_p9)  }
 0x3ed   : > { %2104 = vmatprep.subr.bf16.mxu0 (!%p3306_p9), %v3961_v0  ;;  %v4049_v0 = vld [vmem:[#allocation11 + $0x1ac] ss:$16 sps:$4 sm:$0xff] (!%p3306_p9)  }
 0x3f0   : > { %v3952_v5 = vpop.eup %3951  ;;  %2105 = vmatpush1.bf16.msra.mxu0 (!%p3306_p9), %v3963_v2  ;;  %v4051_v2 = vld [vmem:[#allocation11 + $0x1c4] ss:$16 sps:$4 sm:$0xff] (!%p3306_p9)  }
 0x3f1   : > { %v3954_v34 = vpop.eup %3953  ;;  %v1735_v35 = vmul.f32 %v3952_v5, %v1671_v42  ;;  %2106 = vmatprep.subr.bf16.mxu0 (!%p3306_p9), %v3964_v4  ;;  %v4007_v42 = vld [vmem:[#allocation11 + $0xcc] ss:$16 sps:$4 sm:$0xff] (!%p3306_p9)   ;;  %v4005_v5 = vld [vmem:[#allocation11 + $0xc8] ss:$16 sps:$4 sm:$0xff] (!%p3306_p9)  }
 0x3f2   : > { %v1736_v37 = vmul.f32 %v3954_v34, %v1673_v33  ;;  %v4020_v33 = vld [vmem:[#allocation11 + $0x100] ss:$16 sps:$4 sm:$0xff] (!%p3306_p9)   ;;  %v4021_v34 = vld [vmem:[#allocation11 + $0x124] ss:$16 sps:$4 sm:$0xff] (!%p3306_p9)   ;;  %v4055_v4 = vld [vmem:[#allocation11 + $0x1cc] ss:$16 sps:$4 sm:$0xff] (!%p3306_p9)  }
 0x3f3   : > { %v1738_v45 = vmax.f32 %v1735_v35, 0.0  ;;  %v4013_v35 = vld [vmem:[#allocation11 + $0xec] ss:$16 sps:$4 sm:$0xff] (!%p3306_p9)  }
 0x3f4   : > { %v1739_v38 = vmax.f32 %v1736_v37, 0.0  ;;  %2107 = vmatpush1.bf16.msra.mxu0 (!%p3306_p9), %v3966_v8  ;;  %v4011_v37 = vld [vmem:[#allocation11 + $0xe8] ss:$16 sps:$4 sm:$0xff] (!%p3306_p9)   ;;  %v4057_v8 = vld [vmem:[#allocation11 + $0x1e4] ss:$16 sps:$4 sm:$0xff] (!%p3306_p9)  }
 0x3f5   : > { %2592 = vmatprep.subr.bf16.mxu0 (!%p3306_p9), %v3971_v12  ;;  %v4063_v12 = vld [vmem:[#allocation13 + $0x40] sm:$0xff] (!%p3306_p9)  }
 0x3f6   : > { %1808 = vmatprep.mubr.f32.mxu1 %v1739_v38  ;;  %v4019_v38 = vld [vmem:[#allocation11 + $0x10c] ss:$16 sps:$4 sm:$0xff] (!%p3306_p9)  }
 0x3f7   : > { %1809 = vmatmul.mubr.f32.vlgmr.msra.gmra.mrb[32].mxu1 %v1738_v45  ;;  %v4026_v45 = vld [vmem:[#allocation11 + $0x120] ss:$16 sps:$4 sm:$0xff] (!%p3306_p9)  }
 0x3f8   : > { %2552 = vmatpush1.bf16.msra.mxu1 (!%p3306_p9), %v3972_v6  ;;  %v4053_v6 = vld [vmem:[#allocation11 + $0x1c8] ss:$16 sps:$4 sm:$0xff] (!%p3306_p9)  }
 0x3f9   : > { %2553 = vmatprep.subr.bf16.mxu1 (!%p3306_p9), %v3973_v7  ;;  %v4056_v7 = vld [vmem:[#allocation11 + $0x1c0] ss:$16 sps:$4 sm:$0xff] (!%p3306_p9)  }
 0x3fc   : > { %2554 = vmatpush1.bf16.msra.mxu1 (!%p3306_p9), %v3978_v10  ;;  %v4059_v10 = vld [vmem:[#allocation11 + $0x1e8] ss:$16 sps:$4 sm:$0xff] (!%p3306_p9)  }
 0x3fd   : > { %2555 = vmatprep.subr.bf16.mxu1 (!%p3306_p9), %v3979_v11  ;;  %v4062_v11 = vld [vmem:[#allocation11 + $0x1e0] ss:$16 sps:$4 sm:$0xff] (!%p3306_p9)  }
 0x400   : > { %2556 = vmatpush1.bf16.msra.mxu1 (!%p3306_p9), %v3984_v14  ;;  %v2045_v14 = vld [vmem:[%s5284_s10] sm:$0x3] (!%p3306_p9) }
 0x401   : > { %2557 = vmatprep.subr.bf16.mxu1 (!%p3306_p9), %v3985_v17  ;;  %v2054_v17 = vrot.slane (!%p3306_p9), %v2045_v14, %v4933_v60 }
 0x404   : > { %2558 = vmatpush1.bf16.msra.mxu1 (!%p3306_p9), %v3990_v20 }
 0x405   : > { %2559 = vmatprep.subr.bf16.mxu1 (!%p3306_p9), %v3991_v21 }
 0x408   : > { %2560 = vmatpush1.bf16.msra.mxu1 (!%p3306_p9), %v3996_v23 }
 0x409   : > { %2561 = vmatprep.subr.bf16.mxu1 (!%p3306_p9), %v3997_v25 }
 0x40c   : > { %2562 = vmatpush1.bf16.msra.mxu1 (!%p3306_p9), %v4002_v27  ;;  %v4066_v27 = vld [vmem:[#allocation13 + $0x80] sm:$0xff] (!%p3306_p9)  }
 0x40d   : > { %2563 = vmatprep.subr.bf16.mxu1 (!%p3306_p9), %v4003_v28 }
 0x410   : > { %2564 = vmatpush1.bf16.msra.mxu1 (!%p3306_p9), %v4008_v36  ;;  %v4068_v36 = vld [vmem:[#allocation13 + $0xc8] sm:$0xff] (!%p3306_p9)  }
 0x411   : > { %2565 = vmatprep.subr.bf16.mxu1 (!%p3306_p9), %v4009_v51  ;;  %v4070_v51 = vld [vmem:[#allocation13 + $0x88] sm:$0xff] (!%p3306_p9)  }
 0x414   : > { %2566 = vmatpush1.bf16.msra.mxu1 (!%p3306_p9), %v4014_v39  ;;  %v4073_v39 = vld [vmem:[#allocation13 + $0x10] sm:$0xff] (!%p3306_p9)  }
 0x415   : > { %2567 = vmatprep.subr.bf16.mxu1 (!%p3306_p9), %v4015_v32  ;;  %v4074_v32 = vld [vmem:[#allocation13 + $0x90] sm:$0xff] (!%p3306_p9)  }
 0x418   : > { %2568 = vmatpush1.bf16.msra.mxu1 (!%p3306_p9), %v4020_v33  ;;  %v4076_v33 = vld [vmem:[#allocation13 + $0xd8] sm:$0xff] (!%p3306_p9)  }
 0x419   : > { %2569 = vmatprep.subr.bf16.mxu1 (!%p3306_p9), %v4021_v34  ;;  %v4078_v34 = vld [vmem:[#allocation13 + $0x98] sm:$0xff] (!%p3306_p9)  }
 0x41c   : > { %2570 = vmatpush1.bf16.msra.mxu1 (!%p3306_p9), %v4026_v45  ;;  %v4082_v45 = vld [vmem:[#allocation13 + $0xa0] sm:$0xff] (!%p3306_p9)  }
 0x4aa   : > { %v3504_v40 = vpop.f32.mrb[12].mxu0 }
 0x4ab   : > { %v3505_v41 = vpop.f32.mrb[13].mxu0 }
 0x4ac   : > { %v3506_v43 = vadd.f32 %v3505_v41, %v3504_v40  ;;  %v4027_v40 = vld [vmem:[#allocation11 + $0x144] ss:$16 sps:$4 sm:$0xff] (!%p3306_p9)   ;;  %v4032_v41 = vld [vmem:[#allocation11 + $0x140] ss:$16 sps:$4 sm:$0xff] (!%p3306_p9)  }
 0x4ad   : > { %2571 = vmatprep.subr.bf16.mxu1 (!%p3306_p9), %v4027_v40  ;;  %v4083_v40 = vld [vmem:[#allocation13 + $0x68] sm:$0xff] (!%p3306_p9)  }
 0x4ae   : > { %2572 = vmatpush1.bf16.msra.mxu1 (!%p3306_p9), %v4032_v41  ;;  %v4084_v41 = vld [vmem:[#allocation13 + $0xe8] sm:$0xff] (!%p3306_p9)  }
 0x4ba   : > { %v2023_v44 = vpop.f32.mrb[2].mxu0 }
 0x4bb   : > { %v3625_v48 = vpop.f32.mrb[3].mxu0 }
 0x4bc   : > { %v4025_v48 = vld [vmem:[#allocation11 + $0x12c] ss:$16 sps:$4 sm:$0xff] (!%p3306_p9)  }
 0x4ca   : > { %v3460_v49 = vpop.f32.mrb[32].mxu1 }
 0x4cb   : > { %v3461_v50 = vpop.f32.mrb[33].mxu1 }
 0x4cc   : > { %v3462_v52 = vadd.f32 %v3461_v50, %v3460_v49  ;;  %v4038_v49 = vld [vmem:[#allocation11 + $0x160] ss:$16 sps:$4 sm:$0xff] (!%p3306_p9)   ;;  %v4023_v50 = vld [vmem:[#allocation11 + $0x128] ss:$16 sps:$4 sm:$0xff] (!%p3306_p9)  }
 0x4ce   : > { %v3744_v53 = vadd.f32 %v3506_v43, %v3462_v52  ;;  %v4017_v43 = vld [vmem:[#allocation11 + $0x108] ss:$16 sps:$4 sm:$0xff] (!%p3306_p9)   ;;  %v4039_v52 = vld [vmem:[#allocation11 + $0x184] ss:$16 sps:$4 sm:$0xff] (!%p3306_p9)  }
 0x4cf   : > { %2034 = sbr.rel (%p3306_p9) target bundleno = 1907 (0x773), region = 120 }
 0x4d0   : > { %v3745_v16 = vadd.f32 %v3744_v53, %v2023_v44  ;;  %v4033_v44 = vld [vmem:[#allocation11 + $0x164] ss:$16 sps:$4 sm:$0xff] (!%p3306_p9)   ;;  %v4031_v53 = vld [vmem:[#allocation11 + $0x14c] ss:$16 sps:$4 sm:$0xff] (!%p3306_p9)  }
 0x4d1   : > { %2573 = vmatprep.subr.bf16.mxu1 (!%p3306_p9), %v4033_v44  ;;  %v4086_v44 = vld [vmem:[#allocation13 + $0xa8] sm:$0xff] (!%p3306_p9)  }
 0x4d2   : > { %vm2027_vm6 = vcmp.ge.f32.partialorder %v3745_v16, 0.0  ;;  %v2028_v54 = vmul.f32 0.01, %v3745_v16  ;;  %2574 = vmatpush1.bf16.msra.mxu1 (!%p3306_p9), %v4038_v49  ;;  %v4088_v49 = vld [vmem:[#allocation13 + $0xf0] sm:$0xff] (!%p3306_p9)  }
 0x4d3   : > { %2575 = vmatprep.subr.bf16.mxu1 (!%p3306_p9), %v4039_v52  ;;  %v4090_v52 = vld [vmem:[#allocation13 + $0xb0] sm:$0xff] (!%p3306_p9)  }
 0x4d4   : > { %v2029_v55 = vsel %vm2027_vm6, %v3745_v16, %v2028_v54  ;;  %v4044_v16 = vld [vmem:[#allocation11 + $0x180] ss:$16 sps:$4 sm:$0xff] (!%p3306_p9)   ;;  %v4029_v54 = vld [vmem:[#allocation11 + $0x148] ss:$16 sps:$4 sm:$0xff] (!%p3306_p9)  }
 0x4d5   : > { %2030 = vst.msk [vmem:[#allocation2] sm:$0xff] %vm856_vm1, %v2029_v55  ;;  %v4045_v55 = vld [vmem:[#allocation11 + $0x1a4] ss:$16 sps:$4 sm:$0xff] (!%p3306_p9)  }
 0x4d6   : > { %2576 = vmatpush1.bf16.msra.mxu1 %v4044_v16  ;;  %v4092_v16 = vld [vmem:[#allocation13 + $0xf8] sm:$0xff]  }
 0x4d7   : > { %2577 = vmatprep.subr.bf16.mxu1 %v4045_v55  ;;  %v4094_v55 = vld [vmem:[#allocation13 + $0xb8] sm:$0xff]  }
 0x4da   : > { %2578 = vmatpush1.bf16.msra.mxu1 %v4050_v59  ;;  %v2225_v59 = vsub.s32 3, %v4926_v57 }
 0x4db   : > { %2579 = vmatprep.subr.bf16.mxu1 %v4051_v2 }
 0x4dc   : > { %v2035_v9 = vld [vmem:[#allocation2] sm:$0xff] }
 0x4dd   : > { %v2044_v13 = vpack.c.bf16 %v2035_v9, %v2035_v9  ;;  %v4061_v9 = vld [vmem:[#allocation11 + $0x1ec] ss:$16 sps:$4 sm:$0xff]  }
 0x4de   : > { %2580 = vmatpush1.bf16.msra.mxu1 %v4056_v7 }
 0x4df   : > { %3315 = vmatmul.mubr.msk.bf16.vlgmr.msra.gmra.mrb[0].mxu0 %vm856_vm1, %v2044_v13  ;;  %2581 = vmatprep.subr.bf16.mxu1 %v4057_v8  ;;  %v4064_v13 = vld [vmem:[#allocation13 + $0xc0] sm:$0xff]  }
 0x4e0   : > { %2593 = vmatpush1.bf16.msra.mxu0 %v3969_v15  ;;  %v2050_v15 = vrot.slane %v2045_v14, %v4929_v58 }
 0x4e1   : > { %2594 = vmatprep.subr.bf16.mxu0 %v3977_v18 }
 0x4e2   : > { %2582 = vmatpush1.bf16.msra.mxu1 %v4062_v11 }
 0x4e3   : > { %3516 = vmatprep.subr.bf16.mxu1 %v4063_v12 }
 0x4e4   : > { %2595 = vmatpush1.bf16.msra.mxu0 %v3975_v19 }
 0x4e5   : > { %2596 = vmatprep.subr.bf16.mxu0 %v3983_v22 }
 0x4e8   : > { %2597 = vmatpush1.bf16.msra.mxu0 %v3981_v24 }
 0x4e9   : > { %2598 = vmatprep.subr.bf16.mxu0 %v3989_v47 }
 0x4ec   : > { %2599 = vmatpush1.bf16.msra.mxu0 %v3987_v26  ;;  %v4065_v26 = vld [vmem:[#allocation13] sm:$0xff]  }
 0x4ed   : > { %2600 = vmatprep.subr.bf16.mxu0 %v3995_v29  ;;  %v4067_v29 = vld [vmem:[#allocation13 + $0x48] sm:$0xff]  }
 0x4f0   : > { %2601 = vmatpush1.bf16.msra.mxu0 %v3993_v3  ;;  %v4069_v3 = vld [vmem:[#allocation13 + $0x8] sm:$0xff]  }
 0x4f1   : > { %2602 = vmatprep.subr.bf16.mxu0 %v4001_v30  ;;  %v4071_v30 = vld [vmem:[#allocation13 + $0x50] sm:$0xff]  }
 0x4f4   : > { %2603 = vmatpush1.bf16.msra.mxu0 %v3999_v31  ;;  %v4072_v31 = vld [vmem:[#allocation13 + $0xd0] sm:$0xff]  }
 0x4f5   : > { %2604 = vmatprep.subr.bf16.mxu0 %v4007_v42  ;;  %v4075_v42 = vld [vmem:[#allocation13 + $0x58] sm:$0xff]  }
 0x4f8   : > { %2605 = vmatpush1.bf16.msra.mxu0 %v4005_v5  ;;  %v4077_v5 = vld [vmem:[#allocation13 + $0x18] sm:$0xff]  }
 0x4f9   : > { %2606 = vmatprep.subr.bf16.mxu0 %v4013_v35  ;;  %v4079_v35 = vld [vmem:[#allocation13 + $0x60] sm:$0xff]  }
 0x4fc   : > { %2607 = vmatpush1.bf16.msra.mxu0 %v4011_v37  ;;  %v4080_v37 = vld [vmem:[#allocation13 + $0xe0] sm:$0xff]  }
 0x4fd   : > { %2608 = vmatprep.subr.bf16.mxu0 %v4019_v38  ;;  %v4081_v38 = vld [vmem:[#allocation13 + $0x20] sm:$0xff]  }
 0x500   : > { %2609 = vmatpush1.bf16.msra.mxu0 %v4017_v43  ;;  %v4085_v43 = vld [vmem:[#allocation13 + $0x28] sm:$0xff]  }
 0x501   : > { %2610 = vmatprep.subr.bf16.mxu0 %v4025_v48  ;;  %v4087_v48 = vld [vmem:[#allocation13 + $0x70] sm:$0xff]  }
 0x504   : > { %2611 = vmatpush1.bf16.msra.mxu0 %v4023_v50  ;;  %v4089_v50 = vld [vmem:[#allocation13 + $0x30] sm:$0xff]  }
 0x505   : > { %2612 = vmatprep.subr.bf16.mxu0 %v4031_v53  ;;  %v4091_v53 = vld [vmem:[#allocation13 + $0x78] sm:$0xff]  }
 0x508   : > { %2613 = vmatpush1.bf16.msra.mxu0 %v4029_v54  ;;  %v4093_v54 = vld [vmem:[#allocation13 + $0x38] sm:$0xff]  }
 0x509   : > { %2614 = vmatprep.subr.bf16.mxu0 %v4037_v56  ;;  %v2209_v56 = vld [vmem:[%s5285_s6] sm:$0xf] }
 0x50c   : > { %2615 = vmatpush1.bf16.msra.mxu0 %v4035_v61  ;;  %v2214_v61 = vrot.slane %v2209_v56, %v4929_v58 }
 0x50d   : > { %2616 = vmatprep.subr.bf16.mxu0 %v4043_v62  ;;  %v2222_v62 = vrot.slane %v2209_v56, %v5002_v46 }
 0x510   : > { %2617 = vmatpush1.bf16.msra.mxu0 %v4041_v63  ;;  %v2218_v63 = vrot.slane %v2209_v56, %v4933_v60 }
 0x511   : > { %2618 = vmatprep.subr.bf16.mxu0 %v4049_v0  ;;  %v2226_v0 = vrot.slane %v2209_v56, %v2225_v59 }
 0x514   : > { %2619 = vmatpush1.bf16.msra.mxu0 %v4047_v1 }
 0x515   : > { %2620 = vmatprep.subr.bf16.mxu0 %v4055_v4 }
 0x518   : > { %2621 = vmatpush1.bf16.msra.mxu0 %v4053_v6 }
 0x519   : > { %2622 = vmatprep.subr.bf16.mxu0 %v4061_v9 }
 0x51c   : > { %2623 = vmatpush1.bf16.msra.mxu0 %v4059_v10 }
 0x51d   : > { %3538 = vmatprep.subr.bf16.mxu0 %v4064_v13 }
 0x5b2   : > { %v2134_v18 = vpop.f32.mrb[0].mxu0 }
 0x5b3   : > { %v2135_v19 = vadd.f32 %v2134_v18, %v2050_v15  ;;  %v2136_v20 = vpop.f32.mrb[1].mxu0 }
 0x5b4   : > { %v2137_v21 = vadd.f32 %v2136_v20, %v2054_v17  ;;  %v2138_v22 = vpop.f32.mrb[2].mxu0 }
 0x5b5   : > { %v2141_v23 = vmax.f32 %v2135_v19, 0.0  ;;  %v2139_v24 = vpop.f32.mrb[3].mxu0  ;;  %v3380_v22 = vld [vmem:[%s5286_s18] ss:$0 sm:$0xff] }
 0x5b6   : > { %v2142_v25 = vmax.f32 %v2137_v21, 0.0 }
 0x5b7   : > { %v2207_v28 = vpack.c.bf16 %v2141_v23, %v2141_v23 }
 0x5b8   : > { %v2208_v47 = vpack.c.bf16 %v2142_v25, %v2142_v25 }
 0x5ba   : > { %2583 = vmatprep.mubr.bf16.mxu1 %v2208_v47  ;;  %2624 = vmatprep.mubr.bf16.mxu0 %v2208_v47 }
 0x5bb   : > { %2584 = vmatmul.mubr.bf16.vlgmr.msra.gmra.mrb[0].mxu1 %v2207_v28  ;;  %2625 = vmatmul.mubr.bf16.vlgmr.msra.gmra.mrb[4].mxu0 %v2207_v28 }
 0x5bc   : > { %3517 = vmatpush3.bf16.msra.mxu1 %v4065_v26  ;;  %3539 = vmatpush3.bf16.msra.mxu0 %v4066_v27 }
 0x5bd   : > { %3518 = vmatprep.subr.bf16.mxu1 %v4067_v29  ;;  %3540 = vmatprep.subr.bf16.mxu0 %v4068_v36 }
 0x5c0   : > { %3519 = vmatpush3.bf16.msra.mxu1 %v4069_v3  ;;  %3541 = vmatpush3.bf16.msra.mxu0 %v4070_v51 }
 0x5c1   : > { %3520 = vmatprep.subr.bf16.mxu1 %v4071_v30  ;;  %3542 = vmatprep.subr.bf16.mxu0 %v4072_v31 }
 0x5c4   : > { %3521 = vmatpush3.bf16.msra.mxu1 %v4073_v39  ;;  %3543 = vmatpush3.bf16.msra.mxu0 %v4074_v32 }
 0x5c5   : > { %3522 = vmatprep.subr.bf16.mxu1 %v4075_v42  ;;  %3544 = vmatprep.subr.bf16.mxu0 %v4076_v33 }
 0x5c8   : > { %3523 = vmatpush3.bf16.msra.mxu1 %v4077_v5  ;;  %3545 = vmatpush3.bf16.msra.mxu0 %v4078_v34 }
 0x5c9   : > { %3524 = vmatprep.subr.bf16.mxu1 %v4079_v35  ;;  %3546 = vmatprep.subr.bf16.mxu0 %v4080_v37 }
 0x5cc   : > { %3525 = vmatpush3.bf16.msra.mxu1 %v4081_v38  ;;  %3547 = vmatpush3.bf16.msra.mxu0 %v4082_v45 }
 0x5cd   : > { %3526 = vmatprep.subr.bf16.mxu1 %v4083_v40  ;;  %3548 = vmatprep.subr.bf16.mxu0 %v4084_v41 }
 0x5d0   : > { %3527 = vmatpush3.bf16.msra.mxu1 %v4085_v43  ;;  %3549 = vmatpush3.bf16.msra.mxu0 %v4086_v44 }
 0x5d1   : > { %3528 = vmatprep.subr.bf16.mxu1 %v4087_v48  ;;  %3550 = vmatprep.subr.bf16.mxu0 %v4088_v49 }
 0x5d4   : > { %3529 = vmatpush3.bf16.msra.mxu1 %v4089_v50  ;;  %3551 = vmatpush3.bf16.msra.mxu0 %v4090_v52 }
 0x5d5   : > { %3530 = vmatprep.subr.bf16.mxu1 %v4091_v53  ;;  %3552 = vmatprep.subr.bf16.mxu0 %v4092_v16 }
 0x5d8   : > { %3531 = vmatpush3.bf16.msra.mxu1 %v4093_v54  ;;  %3553 = vmatpush3.bf16.msra.mxu0 %v4094_v55 }
 0x68e   : > { %v2585_v1 = vpop.f32.mrb[0].mxu1  ;;  %v2626_v2 = vpop.f32.mrb[4].mxu0 }
 0x68f   : > { %v2586_v4 = vadd.f32 %v2585_v1, %v2214_v61  ;;  %v2627_v6 = vadd.f32 %v2626_v2, %v2222_v62  ;;  %v2587_v7 = vpop.f32.mrb[1].mxu1  ;;  %v2628_v8 = vpop.f32.mrb[5].mxu0 }
 0x690   : > { %v2588_v9 = vadd.f32 %v2587_v7, %v2218_v63  ;;  %v2629_v10 = vadd.f32 %v2628_v8, %v2226_v0  ;;  %v2589_v11 = vpop.f32.mrb[2].mxu1  ;;  %v2630_v12 = vpop.f32.mrb[6].mxu0 }
 0x691   : > { %v2633_v13 = vmax.f32 %v2586_v4, 0.0  ;;  %v2635_v14 = vmax.f32 %v2627_v6, 0.0  ;;  %v2590_v57 = vpop.f32.mrb[3].mxu1  ;;  %v2631_v15 = vpop.f32.mrb[7].mxu0 }
 0x692   : > { %v2634_v58 = vmax.f32 %v2588_v9, 0.0  ;;  %v2636_v17 = vmax.f32 %v2629_v10, 0.0 }
 0x693   : > { %v2701_v60 = vpack.c.bf16 %v2633_v13, %v2633_v13  ;;  %v2703_v19 = vpack.c.bf16 %v2635_v14, %v2635_v14 }
 0x694   : > { %v2702_v46 = vpack.c.bf16 %v2634_v58, %v2634_v58  ;;  %v2704_v18 = vpack.c.bf16 %v2636_v17, %v2636_v17 }
 0x696   : > { %2936 = vmatprep.mubr.bf16.mxu1 %v2702_v46  ;;  %2976 = vmatprep.mubr.bf16.mxu0 %v2704_v18 }
 0x697   : > { %2937 = vmatmul.mubr.bf16.vlgmr.msra.gmra.mrb[4].mxu1 %v2701_v60  ;;  %2977 = vmatmul.mubr.bf16.vlgmr.msra.gmra.mrb[8].mxu0 %v2703_v19 }
 0x76a   : > { %v3532_v20 = vpop.f32.mrb[4].mxu1  ;;  %v3554_v21 = vpop.f32.mrb[8].mxu0 }
 0x76b   : > { %v3533_v23 = vpop.f32.mrb[5].mxu1  ;;  %v3555_v24 = vpop.f32.mrb[9].mxu0 }
 0x76c   : > { %v3534_v25 = vadd.f32 %v3533_v23, %v3532_v20  ;;  %v3556_v47 = vadd.f32 %v3555_v24, %v3554_v21  ;;  %v3535_v26 = vpop.f32.mrb[6].mxu1  ;;  %v3557_v27 = vpop.f32.mrb[10].mxu0 }
 0x76d   : > { %v3536_v28 = vpop.f32.mrb[7].mxu1  ;;  %v3558_v29 = vpop.f32.mrb[11].mxu0 }
 0x76e   : > { %v2939_v36 = vadd.f32 %v3534_v25, %v3380_v22 }
 0x770   : > { %v2979_v3 = vadd.f32 %v3556_v47, %v2939_v36 }
 0x772   : > { %2984 = vst [vmem:[%s5287_s1] sm:$0xff] %v2979_v3 }
 0x773 PF: > { %s36_s26 = sadd.s32 1, %s4365_s26   ;;  %s5288_s12 = sld [smem:[#allocation20_spill]] }
 0x774   : > { %p33_p11 = scmp.ge.s32.totalorder %s36_s26, 18   ;;  %s5289_s28 = sld [smem:[#allocation19_spill]] }
 0x775   : > { %s5290_s21 = smov %s4349_s22  ;;  %s5291_s22 = smov %s4353_s23 }
 0x776   : > { %s5293_s24 = smov %s4361_s25  ;;  %35 = sbr.rel (!%p33_p11) target bundleno = 23 (0x17), region = 199 }
 0x779   : > { %s5292_s23 = smov %s5288_s12 }
 0x77a   : > { %s5294_s25 = smov %s5289_s28 }
 0x77d   :  { %3004 = vsyncpa [#allocation4], 1 }
 0x77e   :  { %3006 = vsyncpa [#allocation4 + $0x1], 1 }
 0x77f   :  { %3007 = vsyncpa [#allocation6], 1 }
 0x780   :  { %3009 = vsyncpa [#allocation6 + $0x1], 1 }
 0x781   :  { %3010 = vsyncpa [#allocation9], 1 }
 0x782   :  { %3012 = vsyncpa [#allocation9 + $0x1], 1 }
 0x783   :  { %3013 = vsyncpa [#allocation12], 1 }

</bundles_post_ra>
